<compile_context>
chip_gen: v7x
topology: tpu7x:2x2x1
jax: 0.10.0
libtpu: 0.0.40
codegen_flags: <defaults>
</compile_context>

<pallas_src>
import jax
import jax.numpy as jnp
from jax.experimental import pallas as pl
from jax.experimental.pallas import tpu as pltpu


# ----------------------------------------------------------------- config ----
IN_DIM = 487
LATENT = 50
# (fan_in, fan_out) for the 8 nn.Linear layers, PyTorch order.
LAYER_DIMS = [
    (IN_DIM, 400), (400, 200), (200, 100), (100, LATENT),   # encoder (ReLU x4)
    (LATENT, 100), (100, 200), (200, 400), (400, IN_DIM),   # decoder (ReLU x3)
]


def _round_up(n, m):
    return ((n + m - 1) // m) * m


IN_DIM_PAD = _round_up(IN_DIM, 128)   # 512


# ----------------------------------------------------------------- kernel ----
def _autoencoder_kernel(
    x_ref,
    # encoder params
    w1, b1, w2, b2, w3, b3, w4, b4,
    # decoder params
    w5, b5, w6, b6, w7, b7, w8, b8,
    out_ref,
):
    def linear(h, w_ref, b_ref, relu):
        # bf16 x bf16 matmul with f32 accumulation on the MXU; bias add and
        # ReLU are done in f32 (no bf16 VPU on v5e).
        y = jnp.dot(h.astype(jnp.bfloat16), w_ref[...],
                    preferred_element_type=jnp.float32)
        y = y + b_ref[...]            # b is (1, out) -> broadcasts over batch
        if relu:
            y = jnp.maximum(y, 0.0)
        return y

    h = x_ref[...]                    # bf16 tile; cast handled inside linear()

    # Encoder (padded): 512 -> 512 -> 256 -> 128 -> 128, ReLU on all four.
    h = linear(h, w1, b1, relu=True)
    h = linear(h, w2, b2, relu=True)
    h = linear(h, w3, b3, relu=True)
    h = linear(h, w4, b4, relu=True)

    # Decoder (padded): 128 -> 128 -> 256 -> 512 -> 512, no ReLU on the last.
    h = linear(h, w5, b5, relu=True)
    h = linear(h, w6, b6, relu=True)
    h = linear(h, w7, b7, relu=True)
    h = linear(h, w8, b8, relu=False)

    out_ref[...] = h.astype(out_ref.dtype)


# ------------------------------------------------------------- parameters ----
def init_params(key):
    """PyTorch-style uniform(-1/sqrt(fan_in), 1/sqrt(fan_in)) init.

    Weights produced already transposed to (in, out); biases as (1, out).
    Raw (unpadded) f32 — used by the reference and fed to prepare_params().
    """
    params = []
    for (fan_in, fan_out) in LAYER_DIMS:
        key, kw, kb = jax.random.split(key, 3)
        bound = 1.0 / jnp.sqrt(jnp.float32(fan_in))
        w = jax.random.uniform(kw, (fan_in, fan_out), jnp.float32, -bound, bound)
        b = jax.random.uniform(kb, (1, fan_out), jnp.float32, -bound, bound)
        params.extend([w, b])
    return params


def prepare_params(raw_params):
    """Pad every dim to a multiple of 128 (zero-filled); W -> bf16, b -> f32."""
    padded = []
    for i, (fan_in, fan_out) in enumerate(LAYER_DIMS):
        w, b = raw_params[2 * i], raw_params[2 * i + 1]
        fi_p, fo_p = _round_up(fan_in, 128), _round_up(fan_out, 128)
        w_p = jnp.zeros((fi_p, fo_p), jnp.bfloat16)
        w_p = w_p.at[:fan_in, :fan_out].set(w.astype(jnp.bfloat16))
        b_p = jnp.zeros((1, fo_p), jnp.float32)
        b_p = b_p.at[:, :fan_out].set(b)
        padded.extend([w_p, b_p])
    return padded


# ----------------------------------------------------------------- wrapper ---
@jax.jit
def autoencoder_forward(x, *padded_params):
    batch = x.shape[0]
    # Batch tile: 128 rows when the batch is large enough to feed the MXU,
    # otherwise the batch rounded up to the (8,·) sublane requirement.
    tile_b = 128 if batch >= 128 else _round_up(max(batch, 1), 8)
    batch_pad = _round_up(batch, tile_b)

    # Zero-pad input to (batch_pad, 512) in bf16 — exact under the zero-padded
    # weights, and the kernel feeds bf16 to the MXU anyway.
    x_p = jnp.zeros((batch_pad, IN_DIM_PAD), jnp.bfloat16)
    x_p = x_p.at[:batch, :IN_DIM].set(x.astype(jnp.bfloat16))

    grid = (batch_pad // tile_b,)
    in_spec = pl.BlockSpec((tile_b, IN_DIM_PAD), lambda i: (i, 0))
    out_spec = pl.BlockSpec((tile_b, IN_DIM_PAD), lambda i: (i, 0))
    # Constant block index -> weights/biases fetched once and kept resident.
    param_specs = [pl.BlockSpec(p.shape, lambda i: (0, 0)) for p in padded_params]

    out = pl.pallas_call(
        _autoencoder_kernel,
        out_shape=jax.ShapeDtypeStruct((batch_pad, IN_DIM_PAD), jnp.float32),
        grid=grid,
        in_specs=[in_spec] + param_specs,
        out_specs=out_spec,
        compiler_params=pltpu.CompilerParams(
            dimension_semantics=("parallel",),   # megacore split on v7x
            vmem_limit_bytes=16 << 20,           # plenty; physical >= 64 MiB
        ),
    )(x_p, *padded_params)

    return out[:batch, :IN_DIM].astype(x.dtype)


# ---------------------------------------------------------------- reference --
def autoencoder_reference(x, raw_params):
    """Pure-JAX reference mirroring the kernel's bf16-weight / f32-acc numerics."""
    h = x.astype(jnp.float32)
    n_layers = len(raw_params) // 2
    for i in range(n_layers):
        w, b = raw_params[2 * i], raw_params[2 * i + 1]
        h = jnp.dot(h.astype(jnp.bfloat16), w.astype(jnp.bfloat16),
                    preferred_element_type=jnp.float32) + b
        if i != n_layers - 1:  # final decoder layer has no ReLU
            h = jnp.maximum(h, 0.0)
    return h


# --------------------------------------------------------------------- main --
if __name__ == "__main__":
    key = jax.random.PRNGKey(0)
    key, kx = jax.random.split(key)

    batch = 8
    x = jax.random.normal(kx, (batch, IN_DIM), jnp.float32)

    raw_params = init_params(key)
    padded_params = prepare_params(raw_params)

    out = autoencoder_forward(x, *padded_params)
    out = jax.block_until_ready(out)

    ref = autoencoder_reference(x, raw_params)
    assert out.shape == (batch, IN_DIM), out.shape
    max_err = float(jnp.max(jnp.abs(out - ref)))
    assert jnp.allclose(out, ref, atol=5e-3, rtol=5e-3), max_err

    print("KERNEL_OK")
</pallas_src>

<mosaic_0001>
module attributes {stable_mosaic.version = 11 : i64} {
  func.func @_autoencoder_kernel(%arg0: i32, %arg1: memref<8x512xbf16, #tpu.memory_space<vmem>>, %arg2: memref<512x512xbf16, #tpu.memory_space<vmem>>, %arg3: memref<1x512xf32, #tpu.memory_space<vmem>>, %arg4: memref<512x256xbf16, #tpu.memory_space<vmem>>, %arg5: memref<1x256xf32, #tpu.memory_space<vmem>>, %arg6: memref<256x128xbf16, #tpu.memory_space<vmem>>, %arg7: memref<1x128xf32, #tpu.memory_space<vmem>>, %arg8: memref<128x128xbf16, #tpu.memory_space<vmem>>, %arg9: memref<1x128xf32, #tpu.memory_space<vmem>>, %arg10: memref<128x128xbf16, #tpu.memory_space<vmem>>, %arg11: memref<1x128xf32, #tpu.memory_space<vmem>>, %arg12: memref<128x256xbf16, #tpu.memory_space<vmem>>, %arg13: memref<1x256xf32, #tpu.memory_space<vmem>>, %arg14: memref<256x512xbf16, #tpu.memory_space<vmem>>, %arg15: memref<1x512xf32, #tpu.memory_space<vmem>>, %arg16: memref<512x512xbf16, #tpu.memory_space<vmem>>, %arg17: memref<1x512xf32, #tpu.memory_space<vmem>>, %arg18: memref<8x512xf32, #tpu.memory_space<vmem>>) attributes {dimension_semantics = [#tpu.dimension_semantics<parallel>], iteration_bounds = array<i64: 1>, scalar_prefetch = 0 : i64, scratch_operands = 0 : i64, tpu.core_type = #tpu.core_type<tc>, window_params = [{transform_indices = @transform_0, window_bounds = array<i64: 8, 512>}, {pipeline_mode = #tpu.pipeline_mode<synchronous>, transform_indices = @transform_1, window_bounds = array<i64: 512, 512>}, {pipeline_mode = #tpu.pipeline_mode<synchronous>, transform_indices = @transform_2, window_bounds = array<i64: 1, 512>}, {pipeline_mode = #tpu.pipeline_mode<synchronous>, transform_indices = @transform_3, window_bounds = array<i64: 512, 256>}, {pipeline_mode = #tpu.pipeline_mode<synchronous>, transform_indices = @transform_4, window_bounds = array<i64: 1, 256>}, {pipeline_mode = #tpu.pipeline_mode<synchronous>, transform_indices = @transform_5, window_bounds = array<i64: 256, 128>}, {pipeline_mode = #tpu.pipeline_mode<synchronous>, transform_indices = @transform_6, window_bounds = array<i64: 1, 128>}, {pipeline_mode = #tpu.pipeline_mode<synchronous>, transform_indices = @transform_7, window_bounds = array<i64: 128, 128>}, {pipeline_mode = #tpu.pipeline_mode<synchronous>, transform_indices = @transform_8, window_bounds = array<i64: 1, 128>}, {pipeline_mode = #tpu.pipeline_mode<synchronous>, transform_indices = @transform_9, window_bounds = array<i64: 128, 128>}, {pipeline_mode = #tpu.pipeline_mode<synchronous>, transform_indices = @transform_10, window_bounds = array<i64: 1, 128>}, {pipeline_mode = #tpu.pipeline_mode<synchronous>, transform_indices = @transform_11, window_bounds = array<i64: 128, 256>}, {pipeline_mode = #tpu.pipeline_mode<synchronous>, transform_indices = @transform_12, window_bounds = array<i64: 1, 256>}, {pipeline_mode = #tpu.pipeline_mode<synchronous>, transform_indices = @transform_13, window_bounds = array<i64: 256, 512>}, {pipeline_mode = #tpu.pipeline_mode<synchronous>, transform_indices = @transform_14, window_bounds = array<i64: 1, 512>}, {pipeline_mode = #tpu.pipeline_mode<synchronous>, transform_indices = @transform_15, window_bounds = array<i64: 512, 512>}, {pipeline_mode = #tpu.pipeline_mode<synchronous>, transform_indices = @transform_16, window_bounds = array<i64: 1, 512>}, {transform_indices = @transform_17, window_bounds = array<i64: 8, 512>}]} {
    %c0 = arith.constant 0 : index
    %c0_0 = arith.constant 0 : index
    %0 = vector.load %arg1[%c0, %c0_0] : memref<8x512xbf16, #tpu.memory_space<vmem>>, vector<8x512xbf16>
    %c0_1 = arith.constant 0 : index
    %c0_2 = arith.constant 0 : index
    %1 = vector.load %arg2[%c0_1, %c0_2] : memref<512x512xbf16, #tpu.memory_space<vmem>>, vector<512x512xbf16>
    %cst = arith.constant dense<0.000000e+00> : vector<8x512xf32>
    %2 = tpu.matmul %0, %1, %cst {dimension_numbers = #tpu.dot_dimension_numbers<[1], [0], [0], [1], [0, 0, 1, 1], [], []>} : vector<8x512xbf16>, vector<512x512xbf16>, vector<8x512xf32> -> vector<8x512xf32>
    %c0_3 = arith.constant 0 : index
    %c0_4 = arith.constant 0 : index
    %3 = vector.load %arg3[%c0_3, %c0_4] : memref<1x512xf32, #tpu.memory_space<vmem>>, vector<1x512xf32>
    %4 = vector.broadcast %3 : vector<1x512xf32> to vector<8x512xf32>
    %5 = arith.addf %2, %4 : vector<8x512xf32>
    %cst_5 = arith.constant 0.000000e+00 : f32
    %6 = vector.broadcast %cst_5 : f32 to vector<8x512xf32>
    %7 = arith.maximumf %5, %6 : vector<8x512xf32>
    %8 = arith.truncf %7 : vector<8x512xf32> to vector<8x512xbf16>
    %c0_6 = arith.constant 0 : index
    %c0_7 = arith.constant 0 : index
    %9 = vector.load %arg4[%c0_6, %c0_7] : memref<512x256xbf16, #tpu.memory_space<vmem>>, vector<512x256xbf16>
    %cst_8 = arith.constant dense<0.000000e+00> : vector<8x256xf32>
    %10 = tpu.matmul %8, %9, %cst_8 {dimension_numbers = #tpu.dot_dimension_numbers<[1], [0], [0], [1], [0, 0, 1, 1], [], []>} : vector<8x512xbf16>, vector<512x256xbf16>, vector<8x256xf32> -> vector<8x256xf32>
    %c0_9 = arith.constant 0 : index
    %c0_10 = arith.constant 0 : index
    %11 = vector.load %arg5[%c0_9, %c0_10] : memref<1x256xf32, #tpu.memory_space<vmem>>, vector<1x256xf32>
    %12 = vector.broadcast %11 : vector<1x256xf32> to vector<8x256xf32>
    %13 = arith.addf %10, %12 : vector<8x256xf32>
    %cst_11 = arith.constant 0.000000e+00 : f32
    %14 = vector.broadcast %cst_11 : f32 to vector<8x256xf32>
    %15 = arith.maximumf %13, %14 : vector<8x256xf32>
    %16 = arith.truncf %15 : vector<8x256xf32> to vector<8x256xbf16>
    %c0_12 = arith.constant 0 : index
    %c0_13 = arith.constant 0 : index
    %17 = vector.load %arg6[%c0_12, %c0_13] : memref<256x128xbf16, #tpu.memory_space<vmem>>, vector<256x128xbf16>
    %cst_14 = arith.constant dense<0.000000e+00> : vector<8x128xf32>
    %18 = tpu.matmul %16, %17, %cst_14 {dimension_numbers = #tpu.dot_dimension_numbers<[1], [0], [0], [1], [0, 0, 1, 1], [], []>} : vector<8x256xbf16>, vector<256x128xbf16>, vector<8x128xf32> -> vector<8x128xf32>
    %c0_15 = arith.constant 0 : index
    %c0_16 = arith.constant 0 : index
    %19 = vector.load %arg7[%c0_15, %c0_16] : memref<1x128xf32, #tpu.memory_space<vmem>>, vector<1x128xf32>
    %20 = vector.broadcast %19 : vector<1x128xf32> to vector<8x128xf32>
    %21 = arith.addf %18, %20 : vector<8x128xf32>
    %cst_17 = arith.constant 0.000000e+00 : f32
    %22 = vector.broadcast %cst_17 : f32 to vector<8x128xf32>
    %23 = arith.maximumf %21, %22 : vector<8x128xf32>
    %24 = arith.truncf %23 : vector<8x128xf32> to vector<8x128xbf16>
    %c0_18 = arith.constant 0 : index
    %c0_19 = arith.constant 0 : index
    %25 = vector.load %arg8[%c0_18, %c0_19] : memref<128x128xbf16, #tpu.memory_space<vmem>>, vector<128x128xbf16>
    %cst_20 = arith.constant dense<0.000000e+00> : vector<8x128xf32>
    %26 = tpu.matmul %24, %25, %cst_20 {dimension_numbers = #tpu.dot_dimension_numbers<[1], [0], [0], [1], [0, 0, 1, 1], [], []>} : vector<8x128xbf16>, vector<128x128xbf16>, vector<8x128xf32> -> vector<8x128xf32>
    %c0_21 = arith.constant 0 : index
    %c0_22 = arith.constant 0 : index
    %27 = vector.load %arg9[%c0_21, %c0_22] : memref<1x128xf32, #tpu.memory_space<vmem>>, vector<1x128xf32>
    %28 = vector.broadcast %27 : vector<1x128xf32> to vector<8x128xf32>
    %29 = arith.addf %26, %28 : vector<8x128xf32>
    %cst_23 = arith.constant 0.000000e+00 : f32
    %30 = vector.broadcast %cst_23 : f32 to vector<8x128xf32>
    %31 = arith.maximumf %29, %30 : vector<8x128xf32>
    %32 = arith.truncf %31 : vector<8x128xf32> to vector<8x128xbf16>
    %c0_24 = arith.constant 0 : index
    %c0_25 = arith.constant 0 : index
    %33 = vector.load %arg10[%c0_24, %c0_25] : memref<128x128xbf16, #tpu.memory_space<vmem>>, vector<128x128xbf16>
    %cst_26 = arith.constant dense<0.000000e+00> : vector<8x128xf32>
    %34 = tpu.matmul %32, %33, %cst_26 {dimension_numbers = #tpu.dot_dimension_numbers<[1], [0], [0], [1], [0, 0, 1, 1], [], []>} : vector<8x128xbf16>, vector<128x128xbf16>, vector<8x128xf32> -> vector<8x128xf32>
    %c0_27 = arith.constant 0 : index
    %c0_28 = arith.constant 0 : index
    %35 = vector.load %arg11[%c0_27, %c0_28] : memref<1x128xf32, #tpu.memory_space<vmem>>, vector<1x128xf32>
    %36 = vector.broadcast %35 : vector<1x128xf32> to vector<8x128xf32>
    %37 = arith.addf %34, %36 : vector<8x128xf32>
    %cst_29 = arith.constant 0.000000e+00 : f32
    %38 = vector.broadcast %cst_29 : f32 to vector<8x128xf32>
    %39 = arith.maximumf %37, %38 : vector<8x128xf32>
    %40 = arith.truncf %39 : vector<8x128xf32> to vector<8x128xbf16>
    %c0_30 = arith.constant 0 : index
    %c0_31 = arith.constant 0 : index
    %41 = vector.load %arg12[%c0_30, %c0_31] : memref<128x256xbf16, #tpu.memory_space<vmem>>, vector<128x256xbf16>
    %cst_32 = arith.constant dense<0.000000e+00> : vector<8x256xf32>
    %42 = tpu.matmul %40, %41, %cst_32 {dimension_numbers = #tpu.dot_dimension_numbers<[1], [0], [0], [1], [0, 0, 1, 1], [], []>} : vector<8x128xbf16>, vector<128x256xbf16>, vector<8x256xf32> -> vector<8x256xf32>
    %c0_33 = arith.constant 0 : index
    %c0_34 = arith.constant 0 : index
    %43 = vector.load %arg13[%c0_33, %c0_34] : memref<1x256xf32, #tpu.memory_space<vmem>>, vector<1x256xf32>
    %44 = vector.broadcast %43 : vector<1x256xf32> to vector<8x256xf32>
    %45 = arith.addf %42, %44 : vector<8x256xf32>
    %cst_35 = arith.constant 0.000000e+00 : f32
    %46 = vector.broadcast %cst_35 : f32 to vector<8x256xf32>
    %47 = arith.maximumf %45, %46 : vector<8x256xf32>
    %48 = arith.truncf %47 : vector<8x256xf32> to vector<8x256xbf16>
    %c0_36 = arith.constant 0 : index
    %c0_37 = arith.constant 0 : index
    %49 = vector.load %arg14[%c0_36, %c0_37] : memref<256x512xbf16, #tpu.memory_space<vmem>>, vector<256x512xbf16>
    %cst_38 = arith.constant dense<0.000000e+00> : vector<8x512xf32>
    %50 = tpu.matmul %48, %49, %cst_38 {dimension_numbers = #tpu.dot_dimension_numbers<[1], [0], [0], [1], [0, 0, 1, 1], [], []>} : vector<8x256xbf16>, vector<256x512xbf16>, vector<8x512xf32> -> vector<8x512xf32>
    %c0_39 = arith.constant 0 : index
    %c0_40 = arith.constant 0 : index
    %51 = vector.load %arg15[%c0_39, %c0_40] : memref<1x512xf32, #tpu.memory_space<vmem>>, vector<1x512xf32>
    %52 = vector.broadcast %51 : vector<1x512xf32> to vector<8x512xf32>
    %53 = arith.addf %50, %52 : vector<8x512xf32>
    %cst_41 = arith.constant 0.000000e+00 : f32
    %54 = vector.broadcast %cst_41 : f32 to vector<8x512xf32>
    %55 = arith.maximumf %53, %54 : vector<8x512xf32>
    %56 = arith.truncf %55 : vector<8x512xf32> to vector<8x512xbf16>
    %c0_42 = arith.constant 0 : index
    %c0_43 = arith.constant 0 : index
    %57 = vector.load %arg16[%c0_42, %c0_43] : memref<512x512xbf16, #tpu.memory_space<vmem>>, vector<512x512xbf16>
    %cst_44 = arith.constant dense<0.000000e+00> : vector<8x512xf32>
    %58 = tpu.matmul %56, %57, %cst_44 {dimension_numbers = #tpu.dot_dimension_numbers<[1], [0], [0], [1], [0, 0, 1, 1], [], []>} : vector<8x512xbf16>, vector<512x512xbf16>, vector<8x512xf32> -> vector<8x512xf32>
    %c0_45 = arith.constant 0 : index
    %c0_46 = arith.constant 0 : index
    %59 = vector.load %arg17[%c0_45, %c0_46] : memref<1x512xf32, #tpu.memory_space<vmem>>, vector<1x512xf32>
    %60 = vector.broadcast %59 : vector<1x512xf32> to vector<8x512xf32>
    %61 = arith.addf %58, %60 : vector<8x512xf32>
    %c0_47 = arith.constant 0 : index
    %c0_48 = arith.constant 0 : index
    %62 = vector.load %arg18[%c0_47, %c0_48] : memref<8x512xf32, #tpu.memory_space<vmem>>, vector<8x512xf32>
    tpu.vector_store %arg18[%c0_47, %c0_48], %61 {strides = array<i32>} : memref<8x512xf32, #tpu.memory_space<vmem>>, vector<8x512xf32>,
    return
  }
  func.func @transform_0(%arg0: i32) -> (i32, i32) {
    %c0_i32 = arith.constant 0 : i32
    %c0_i32_0 = arith.constant 0 : i32
    return %arg0, %c0_i32 : i32, i32
  }
  func.func @transform_1(%arg0: i32) -> (i32, i32) {
    %c0_i32 = arith.constant 0 : i32
    %c0_i32_0 = arith.constant 0 : i32
    %c0_i32_1 = arith.constant 0 : i32
    return %c0_i32, %c0_i32_0 : i32, i32
  }
  func.func @transform_2(%arg0: i32) -> (i32, i32) {
    %c0_i32 = arith.constant 0 : i32
    %c0_i32_0 = arith.constant 0 : i32
    %c0_i32_1 = arith.constant 0 : i32
    return %c0_i32, %c0_i32_0 : i32, i32
  }
  func.func @transform_3(%arg0: i32) -> (i32, i32) {
    %c0_i32 = arith.constant 0 : i32
    %c0_i32_0 = arith.constant 0 : i32
    %c0_i32_1 = arith.constant 0 : i32
    return %c0_i32, %c0_i32_0 : i32, i32
  }
  func.func @transform_4(%arg0: i32) -> (i32, i32) {
    %c0_i32 = arith.constant 0 : i32
    %c0_i32_0 = arith.constant 0 : i32
    %c0_i32_1 = arith.constant 0 : i32
    return %c0_i32, %c0_i32_0 : i32, i32
  }
  func.func @transform_5(%arg0: i32) -> (i32, i32) {
    %c0_i32 = arith.constant 0 : i32
    %c0_i32_0 = arith.constant 0 : i32
    %c0_i32_1 = arith.constant 0 : i32
    return %c0_i32, %c0_i32_0 : i32, i32
  }
  func.func @transform_6(%arg0: i32) -> (i32, i32) {
    %c0_i32 = arith.constant 0 : i32
    %c0_i32_0 = arith.constant 0 : i32
    %c0_i32_1 = arith.constant 0 : i32
    return %c0_i32, %c0_i32_0 : i32, i32
  }
  func.func @transform_7(%arg0: i32) -> (i32, i32) {
    %c0_i32 = arith.constant 0 : i32
    %c0_i32_0 = arith.constant 0 : i32
    %c0_i32_1 = arith.constant 0 : i32
    return %c0_i32, %c0_i32_0 : i32, i32
  }
  func.func @transform_8(%arg0: i32) -> (i32, i32) {
    %c0_i32 = arith.constant 0 : i32
    %c0_i32_0 = arith.constant 0 : i32
    %c0_i32_1 = arith.constant 0 : i32
    return %c0_i32, %c0_i32_0 : i32, i32
  }
  func.func @transform_9(%arg0: i32) -> (i32, i32) {
    %c0_i32 = arith.constant 0 : i32
    %c0_i32_0 = arith.constant 0 : i32
    %c0_i32_1 = arith.constant 0 : i32
    return %c0_i32, %c0_i32_0 : i32, i32
  }
  func.func @transform_10(%arg0: i32) -> (i32, i32) {
    %c0_i32 = arith.constant 0 : i32
    %c0_i32_0 = arith.constant 0 : i32
    %c0_i32_1 = arith.constant 0 : i32
    return %c0_i32, %c0_i32_0 : i32, i32
  }
  func.func @transform_11(%arg0: i32) -> (i32, i32) {
    %c0_i32 = arith.constant 0 : i32
    %c0_i32_0 = arith.constant 0 : i32
    %c0_i32_1 = arith.constant 0 : i32
    return %c0_i32, %c0_i32_0 : i32, i32
  }
  func.func @transform_12(%arg0: i32) -> (i32, i32) {
    %c0_i32 = arith.constant 0 : i32
    %c0_i32_0 = arith.constant 0 : i32
    %c0_i32_1 = arith.constant 0 : i32
    return %c0_i32, %c0_i32_0 : i32, i32
  }
  func.func @transform_13(%arg0: i32) -> (i32, i32) {
    %c0_i32 = arith.constant 0 : i32
    %c0_i32_0 = arith.constant 0 : i32
    %c0_i32_1 = arith.constant 0 : i32
    return %c0_i32, %c0_i32_0 : i32, i32
  }
  func.func @transform_14(%arg0: i32) -> (i32, i32) {
    %c0_i32 = arith.constant 0 : i32
    %c0_i32_0 = arith.constant 0 : i32
    %c0_i32_1 = arith.constant 0 : i32
    return %c0_i32, %c0_i32_0 : i32, i32
  }
  func.func @transform_15(%arg0: i32) -> (i32, i32) {
    %c0_i32 = arith.constant 0 : i32
    %c0_i32_0 = arith.constant 0 : i32
    %c0_i32_1 = arith.constant 0 : i32
    return %c0_i32, %c0_i32_0 : i32, i32
  }
  func.func @transform_16(%arg0: i32) -> (i32, i32) {
    %c0_i32 = arith.constant 0 : i32
    %c0_i32_0 = arith.constant 0 : i32
    %c0_i32_1 = arith.constant 0 : i32
    return %c0_i32, %c0_i32_0 : i32, i32
  }
  func.func @transform_17(%arg0: i32) -> (i32, i32) {
    %c0_i32 = arith.constant 0 : i32
    %c0_i32_0 = arith.constant 0 : i32
    return %arg0, %c0_i32 : i32, i32
  }
}

</mosaic_0001>

<bundles_post_ra>
// kernel: autoencoder_forward.1
= control target key start
LH: loop header
LB: loop body
LE: loop exit
PB: predicated region body
PF: predicated region fallthrough
CT: control target
= control target key end

     0   :  { %s5393_s0 = inlined_call_operand.vmem [shape: bf16[8,512], index: 0, kind: input, shape index: {}]   ;;  %s5394_s1 = inlined_call_operand.hbm [shape: bf16[512,512], index: 1, kind: input, shape index: {}]   ;;  %s5395_s2 = inlined_call_operand.vmem [shape: f32[1,512], index: 2, kind: input, shape index: {}]   ;;  %s5396_s3 = inlined_call_operand.hbm [shape: bf16[512,256], index: 3, kind: input, shape index: {}]   ;;  %s5397_s4 = inlined_call_operand.vmem [shape: f32[1,256], index: 4, kind: input, shape index: {}]   ;;  %s5398_s5 = inlined_call_operand.hbm [shape: bf16[256,128], index: 5, kind: input, shape index: {}]   ;;  %s5399_s6 = inlined_call_operand.vmem [shape: f32[1,128], index: 6, kind: input, shape index: {}]   ;;  %s5400_s7 = inlined_call_operand.vmem [shape: bf16[128,128], index: 7, kind: input, shape index: {}]   ;;  %s5401_s8 = inlined_call_operand.vmem [shape: f32[1,128], index: 8, kind: input, shape index: {}]   ;;  %s5402_s9 = inlined_call_operand.hbm [shape: bf16[128,128], index: 9, kind: input, shape index: {}]   ;;  %s5403_s10 = inlined_call_operand.vmem [shape: f32[1,128], index: 10, kind: input, shape index: {}]   ;;  %s5404_s11 = inlined_call_operand.hbm [shape: bf16[128,256], index: 11, kind: input, shape index: {}]   ;;  %s5405_s12 = inlined_call_operand.vmem [shape: f32[1,256], index: 12, kind: input, shape index: {}]   ;;  %s5406_s13 = inlined_call_operand.hbm [shape: bf16[256,512], index: 13, kind: input, shape index: {}]   ;;  %s5407_s14 = inlined_call_operand.vmem [shape: f32[1,512], index: 14, kind: input, shape index: {}]   ;;  %s5408_s15 = inlined_call_operand.hbm [shape: bf16[512,512], index: 15, kind: input, shape index: {}]   ;;  %s5409_s16 = inlined_call_operand.vmem [shape: f32[1,512], index: 16, kind: input, shape index: {}]   ;;  %s5410_s17 = inlined_call_operand.hbm [shape: f32[8,512], index: 17, kind: output, shape index: {}]  }
   0x1   :  { %5416 = sst [smem:[#allocation20_spill]] %s5393_s0 }
   0x2   :  { %5417 = sst [smem:[#allocation21_spill]] %s5394_s1 }
   0x3   :  { %22 = vsyncpa [#allocation3], 0 }
   0x4   :  { %23 = vsyncpa [#allocation6], 0 }
   0x5   :  { %24 = vsyncpa [#allocation9], 0 }
   0x6   :  { %25 = vsyncpa [#allocation12], 0 }
   0x7   :  { %26 = vsyncpa [#allocation4], 0  ;;  %s5029_s24 = smov [#allocation5]   ;;  %s4843_s28 = scalar_lea.hbm %s5396_s3, 8192 }
   0x8   :  { %s48_s25 = sshll.u32 %s5029_s24, 4  ;;  %p4844_p0 = scmp.ne.s32.totalorder %s5396_s3, %s4843_s28  ;;  %s49_s25 = int_to_ptr.vmem [resolvable:$true] %s48_s25 }
   0x9   :  { %p4847_p1 = scmp.lt.u32.totalorder %s4843_s28, %s5396_s3 }
   0xb   :  { %p4849_p2 = pnand %p4847_p1, %p4844_p0 }
   0xd   :  { %4852 = shalt.err (!%p4849_p2)
}
   0xe   :  { %s4853_s19 = scalar_lea.vmem %s49_s25, 8192  ;;  %p4858_p4 = scmp.lt.s32.totalorder %s49_s25, %s49_s25 }
   0xf   :  { %p4854_p3 = scmp.ne.s32.totalorder %s49_s25, %s4853_s19  ;;  %p4859_p5 = scmp.lt.s32.totalorder %s4853_s19, %s4853_s19 }
  0x11   :  { %p4860_p6 = por %p4859_p5, %p4858_p4 }
  0x13   :  { %p4861_p7 = pnand %p4860_p6, %p4854_p3 }
  0x15   :  { %4864 = shalt.err (!%p4861_p7)
}
  0x16   :  { %s5413_s1 = smov 128   ;;  %s5414_s20 = smov 8  }
  0x17   :  { %54 = dma.hbm_to_vmem [thread:$0]  %s5396_s3, 8192, %s49_s25, [#allocation6], %s5413_s1, %s5413_s1, %s5414_s20  }
  0x18   :  { %s5032_s23 = smov [#allocation8]   ;;  %s4865_s28 = scalar_lea.hbm %s5402_s9, 1024 }
  0x19   :  { %s80_s24 = sshll.u32 %s5032_s23, 4  ;;  %p4866_p8 = scmp.ne.s32.totalorder %s5402_s9, %s4865_s28  ;;  %s81_s24 = int_to_ptr.vmem [resolvable:$true] %s80_s24 }
  0x1a   :  { %p4869_p9 = scmp.lt.u32.totalorder %s4865_s28, %s5402_s9 }
  0x1c   :  { %p4871_p10 = pnand %p4869_p9, %p4866_p8 }
  0x1e   :  { %4874 = shalt.err (!%p4871_p10)
}
  0x1f   :  { %s4875_s19 = scalar_lea.vmem %s81_s24, 1024  ;;  %p4880_p12 = scmp.lt.s32.totalorder %s81_s24, %s81_s24 }
  0x20   :  { %p4876_p11 = scmp.ne.s32.totalorder %s81_s24, %s4875_s19  ;;  %p4881_p13 = scmp.lt.s32.totalorder %s4875_s19, %s4875_s19 }
  0x22   :  { %p4882_p0 = por %p4881_p13, %p4880_p12 }
  0x24   :  { %p4883_p1 = pnand %p4882_p0, %p4876_p11 }
  0x26   :  { %4886 = shalt.err (!%p4883_p1)
}
  0x27   :  { %s5415_s3 = smov 64   ;;  %s5034_s25 = smov 4  }
  0x28   :  { %86 = dma.hbm_to_vmem [thread:$0]  %s5402_s9, 1024, %s81_s24, [#allocation9], %s5415_s3, %s5415_s3, %s5034_s25  }
  0x29   :  { %s5035_s23 = smov [#allocation11]   ;;  %s5036_s27 = smov [#allocation2]  }
  0x2a   :  { %s108_s26 = sshll.u32 %s5035_s23, 4  ;;  %s34_s28 = sshll.u32 %s5036_s27, 4  ;;  %s109_s26 = int_to_ptr.vmem [resolvable:$true] %s108_s26  ;;  %s5166_s28 = int_to_ptr.vmem [resolvable:$true] %s34_s28 }
  0x2b   :  { %s4887_s30 = scalar_lea.hbm %s5406_s13, 8192 }
  0x2c   :  { %p4888_p2 = scmp.ne.s32.totalorder %s5406_s13, %s4887_s30  ;;  %p4891_p3 = scmp.lt.u32.totalorder %s4887_s30, %s5406_s13 }
  0x2e   :  { %p4893_p4 = pnand %p4891_p3, %p4888_p2 }
  0x30   :  { %4896 = shalt.err (!%p4893_p4)
}
  0x31   :  { %s4897_s9 = scalar_lea.vmem %s109_s26, 8192  ;;  %p4902_p6 = scmp.lt.s32.totalorder %s109_s26, %s109_s26 }
  0x32   :  { %p4898_p5 = scmp.ne.s32.totalorder %s109_s26, %s4897_s9  ;;  %p4903_p7 = scmp.lt.s32.totalorder %s4897_s9, %s4897_s9 }
  0x34   :  { %p4904_p8 = por %p4903_p7, %p4902_p6 }
  0x36   :  { %p4905_p9 = pnand %p4904_p8, %p4898_p5 }
  0x38   :  { %4908 = shalt.err (!%p4905_p9)
}
  0x39   :  { %s5037_s24 = smov 256   ;;  %s5038_s21 = smov 16  }
  0x3a   :  { %114 = dma.hbm_to_vmem [thread:$0]  %s5406_s13, 8192, %s109_s26, [#allocation12], %s5037_s24, %s5037_s24, %s5038_s21  }
  0x3b   :  { %s5418_s27 = sld [smem:[#allocation21_spill]] }
  0x41   :  { %s4909_s29 = scalar_lea.hbm %s5418_s27, 16384 }
  0x42   :  { %p4910_p10 = scmp.ne.s32.totalorder %s5418_s27, %s4909_s29  ;;  %p4913_p11 = scmp.lt.u32.totalorder %s4909_s29, %s5418_s27 }
  0x44   :  { %p4915_p12 = pnand %p4913_p11, %p4910_p10 }
  0x46   :  { %4918 = shalt.err (!%p4915_p12)
}
  0x47   :  { %s4919_s9 = scalar_lea.vmem %s5166_s28, 16384  ;;  %p4924_p0 = scmp.lt.s32.totalorder %s5166_s28, %s5166_s28 }
  0x48   :  { %p4920_p13 = scmp.ne.s32.totalorder %s5166_s28, %s4919_s9  ;;  %p4925_p1 = scmp.lt.s32.totalorder %s4919_s9, %s4919_s9 }
  0x4a   :  { %p4926_p2 = por %p4925_p1, %p4924_p0 }
  0x4c   :  { %p4927_p3 = pnand %p4926_p2, %p4920_p13 }
  0x4e   :  { %4930 = shalt.err (!%p4927_p3)
}
  0x4f   :  { %40 = dma.hbm_to_vmem [thread:$0]  %s5418_s27, 16384, %s5166_s28, [#allocation3], %s5037_s24, %s5037_s24, %s5038_s21  }
  0x50   :  { %s5039_s22 = smov [#allocation7]   ;;  %s5040_s1 = smov [#allocation10]  }
  0x51   :  { %s62_s23 = sshll.u32 %s5039_s22, 4  ;;  %s94_s20 = sshll.u32 %s5040_s1, 4  ;;  %s63_s23 = int_to_ptr.vmem [resolvable:$true] %s62_s23  ;;  %s5203_s20 = int_to_ptr.vmem [resolvable:$true] %s94_s20 }
  0x52   :  { %s4931_s30 = scalar_lea.hbm %s5398_s5, 2048 }
  0x53   :  { %p4932_p4 = scmp.ne.s32.totalorder %s5398_s5, %s4931_s30  ;;  %p4935_p5 = scmp.lt.u32.totalorder %s4931_s30, %s5398_s5 }
  0x55   :  { %p4937_p6 = pnand %p4935_p5, %p4932_p4 }
  0x57   :  { %4940 = shalt.err (!%p4937_p6)
}
  0x58   :  { %s4941_s28 = scalar_lea.vmem %s63_s23, 2048  ;;  %p4946_p8 = scmp.lt.s32.totalorder %s63_s23, %s63_s23 }
  0x59   :  { %p4942_p7 = scmp.ne.s32.totalorder %s63_s23, %s4941_s28  ;;  %p4947_p9 = scmp.lt.s32.totalorder %s4941_s28, %s4941_s28 }
  0x5b   :  { %p4948_p10 = por %p4947_p9, %p4946_p8 }
  0x5d   :  { %p4949_p11 = pnand %p4948_p10, %p4942_p7 }
  0x5f   :  { %4952 = shalt.err (!%p4949_p11)
}
  0x60   :  { %s5419_s27 = smov 64   ;;  %s4953_s3 = scalar_lea.hbm %s5404_s11, 2048 }
  0x61   :  { %68 = dma.hbm_to_vmem [thread:$0]  %s5398_s5, 2048, %s63_s23, [#allocation6], %s5419_s27, %s5419_s27, %s5034_s25  }
  0x62   :  { %p4954_p12 = scmp.ne.s32.totalorder %s5404_s11, %s4953_s3  ;;  %p4957_p13 = scmp.lt.u32.totalorder %s4953_s3, %s5404_s11 }
  0x64   :  { %p4959_p0 = pnand %p4957_p13, %p4954_p12 }
  0x66   :  { %4962 = shalt.err (!%p4959_p0)
}
  0x67   :  { %s4963_s19 = scalar_lea.vmem %s5203_s20, 2048  ;;  %p4968_p2 = scmp.lt.s32.totalorder %s5203_s20, %s5203_s20 }
  0x68   :  { %p4964_p1 = scmp.ne.s32.totalorder %s5203_s20, %s4963_s19  ;;  %p4969_p3 = scmp.lt.s32.totalorder %s4963_s19, %s4963_s19 }
  0x6a   :  { %p4970_p4 = por %p4969_p3, %p4968_p2 }
  0x6c   :  { %p4971_p5 = pnand %p4970_p4, %p4964_p1 }
  0x6e   :  { %4974 = shalt.err (!%p4971_p5)
}
  0x6f   :  { %s5420_s5 = smov 8   ;;  %s5421_s25 = smov 128  }
  0x70   :  { %100 = dma.hbm_to_vmem [thread:$0]  %s5404_s11, 2048, %s5203_s20, [#allocation9], %s5421_s25, %s5421_s25, %s5420_s5  }
  0x71   :  { %s5041_s28 = smov [#allocation13]   ;;  %s4975_s22 = scalar_lea.hbm %s5408_s15, 16384 }
  0x72   :  { %s122_s27 = sshll.u32 %s5041_s28, 4  ;;  %p4976_p6 = scmp.ne.s32.totalorder %s5408_s15, %s4975_s22  ;;  %s123_s27 = int_to_ptr.vmem [resolvable:$true] %s122_s27 }
  0x73   :  { %p4979_p7 = scmp.lt.u32.totalorder %s4975_s22, %s5408_s15 }
  0x75   :  { %p4981_p8 = pnand %p4979_p7, %p4976_p6 }
  0x77   :  { %4984 = shalt.err (!%p4981_p8)
}
  0x78   :  { %s4985_s30 = scalar_lea.vmem %s123_s27, 16384  ;;  %p4990_p10 = scmp.lt.s32.totalorder %s123_s27, %s123_s27 }
  0x79   :  { %p4986_p9 = scmp.ne.s32.totalorder %s123_s27, %s4985_s30  ;;  %p4991_p11 = scmp.lt.s32.totalorder %s4985_s30, %s4985_s30 }
  0x7b   :  { %p4992_p12 = por %p4991_p11, %p4990_p10 }
  0x7d   :  { %p4993_p13 = pnand %p4992_p12, %p4986_p9 }
  0x7f   :  { %4996 = shalt.err (!%p4993_p13)
}
  0x80   :  { %128 = dma.hbm_to_vmem [thread:$0]  %s5408_s15, 16384, %s123_s27, [#allocation12], %s5037_s24, %s5037_s24, %s5038_s21  }
  0x81   :  { %5019 = dma.done.wait [#allocation3], 16384  }
  0x82   :  { %5020 = vsyncadd [#allocation3], 4294950912 }
  0x83   :  { %5021 = dma.done.wait [#allocation6], 10240  }
  0x84   :  { %5022 = vsyncadd [#allocation6], 4294957056 }
  0x85   :  { %5023 = dma.done.wait [#allocation9], 3072  }
  0x86   :  { %5024 = vsyncadd [#allocation9], 4294964224 }
  0x87   :  { %5025 = dma.done.wait [#allocation12], 24576  }
  0x88   :  { %5026 = vsyncadd [#allocation12], 4294942720  ;;  %v4207_v0 = vld [vmem:[#allocation2 + $0x4] ss:$16 sps:$4 sm:$0xff]   ;;  %v4209_v1 = vld [vmem:[#allocation2 + $0xc] ss:$16 sps:$4 sm:$0xff]  }
  0x89   :  { %959 = vmatprep.subr.bf16.mxu0 %v4207_v0  ;;  %v4211_v2 = vld [vmem:[#allocation2] ss:$16 sps:$4 sm:$0xff]   ;;  %v4212_v3 = vld [vmem:[#allocation2 + $0x8] ss:$16 sps:$4 sm:$0xff]   ;;  %1041 = vmatprep.subr.bf16.mxu1 %v4209_v1  ;;  %v4213_v4 = vld [vmem:[#allocation2 + $0x24] ss:$16 sps:$4 sm:$0xff]  }
  0x8a   :  { %960 = vmatpush1.bf16.msra.mxu0 %v4211_v2  ;;  %1042 = vmatpush1.bf16.msra.mxu1 %v4212_v3  ;;  %v4215_v5 = vld [vmem:[#allocation2 + $0x2c] ss:$16 sps:$4 sm:$0xff]   ;;  %v4217_v6 = vld [vmem:[#allocation2 + $0x20] ss:$16 sps:$4 sm:$0xff]   ;;  %v4218_v7 = vld [vmem:[#allocation2 + $0x28] ss:$16 sps:$4 sm:$0xff]  }
  0x8b   :  { %961 = vmatprep.subr.bf16.mxu0 %v4213_v4  ;;  %1043 = vmatprep.subr.bf16.mxu1 %v4215_v5  ;;  %v4219_v8 = vld [vmem:[#allocation2 + $0x44] ss:$16 sps:$4 sm:$0xff]   ;;  %v4221_v9 = vld [vmem:[#allocation2 + $0x4c] ss:$16 sps:$4 sm:$0xff]   ;;  %v4223_v10 = vld [vmem:[#allocation2 + $0x40] ss:$16 sps:$4 sm:$0xff]  }
  0x8c   :  { %v4224_v11 = vld [vmem:[#allocation2 + $0x48] ss:$16 sps:$4 sm:$0xff]   ;;  %v4225_v12 = vld [vmem:[#allocation2 + $0x64] ss:$16 sps:$4 sm:$0xff]   ;;  %v4227_v13 = vld [vmem:[#allocation2 + $0x6c] ss:$16 sps:$4 sm:$0xff]  }
  0x8d   :  { %v4229_v14 = vld [vmem:[#allocation2 + $0x60] ss:$16 sps:$4 sm:$0xff]   ;;  %v4230_v15 = vld [vmem:[#allocation2 + $0x68] ss:$16 sps:$4 sm:$0xff]   ;;  %v4231_v16 = vld [vmem:[#allocation2 + $0x84] ss:$16 sps:$4 sm:$0xff]  }
  0x8e   :  { %962 = vmatpush1.bf16.msra.mxu0 %v4217_v6  ;;  %1044 = vmatpush1.bf16.msra.mxu1 %v4218_v7  ;;  %v4233_v17 = vld [vmem:[#allocation2 + $0x8c] ss:$16 sps:$4 sm:$0xff]   ;;  %v4235_v18 = vld [vmem:[#allocation2 + $0x80] ss:$16 sps:$4 sm:$0xff]   ;;  %v4236_v19 = vld [vmem:[#allocation2 + $0x88] ss:$16 sps:$4 sm:$0xff]  }
  0x8f   :  { %963 = vmatprep.subr.bf16.mxu0 %v4219_v8  ;;  %1045 = vmatprep.subr.bf16.mxu1 %v4221_v9  ;;  %v4237_v20 = vld [vmem:[#allocation2 + $0xa4] ss:$16 sps:$4 sm:$0xff]   ;;  %v4239_v21 = vld [vmem:[#allocation2 + $0xac] ss:$16 sps:$4 sm:$0xff]   ;;  %v4241_v22 = vld [vmem:[#allocation2 + $0xa0] ss:$16 sps:$4 sm:$0xff]  }
  0x90   :  { %v4242_v23 = vld [vmem:[#allocation2 + $0xa8] ss:$16 sps:$4 sm:$0xff]   ;;  %v4243_v24 = vld [vmem:[#allocation2 + $0xc4] ss:$16 sps:$4 sm:$0xff]   ;;  %v4245_v25 = vld [vmem:[#allocation2 + $0xcc] ss:$16 sps:$4 sm:$0xff]  }
  0x91   :  { %v4247_v26 = vld [vmem:[#allocation2 + $0xc0] ss:$16 sps:$4 sm:$0xff]   ;;  %v4248_v27 = vld [vmem:[#allocation2 + $0xc8] ss:$16 sps:$4 sm:$0xff]   ;;  %v4249_v28 = vld [vmem:[#allocation2 + $0xe4] ss:$16 sps:$4 sm:$0xff]  }
  0x92   :  { %964 = vmatpush1.bf16.msra.mxu0 %v4223_v10  ;;  %1046 = vmatpush1.bf16.msra.mxu1 %v4224_v11  ;;  %v4251_v29 = vld [vmem:[#allocation2 + $0xec] ss:$16 sps:$4 sm:$0xff]   ;;  %v4253_v30 = vld [vmem:[#allocation2 + $0xe0] ss:$16 sps:$4 sm:$0xff]   ;;  %v4254_v31 = vld [vmem:[#allocation2 + $0xe8] ss:$16 sps:$4 sm:$0xff]  }
  0x93   :  { %965 = vmatprep.subr.bf16.mxu0 %v4225_v12  ;;  %1047 = vmatprep.subr.bf16.mxu1 %v4227_v13  ;;  %v4255_v32 = vld [vmem:[#allocation2 + $0x104] ss:$16 sps:$4 sm:$0xff]   ;;  %v4257_v33 = vld [vmem:[#allocation2 + $0x10c] ss:$16 sps:$4 sm:$0xff]   ;;  %v4259_v34 = vld [vmem:[#allocation2 + $0x100] ss:$16 sps:$4 sm:$0xff]  }
  0x94   :  { %v4260_v35 = vld [vmem:[#allocation2 + $0x108] ss:$16 sps:$4 sm:$0xff]   ;;  %v4261_v36 = vld [vmem:[#allocation2 + $0x124] ss:$16 sps:$4 sm:$0xff]   ;;  %v4263_v37 = vld [vmem:[#allocation2 + $0x12c] ss:$16 sps:$4 sm:$0xff]  }
  0x95   :  { %v4265_v38 = vld [vmem:[#allocation2 + $0x120] ss:$16 sps:$4 sm:$0xff]   ;;  %v4266_v39 = vld [vmem:[#allocation2 + $0x128] ss:$16 sps:$4 sm:$0xff]   ;;  %v4267_v40 = vld [vmem:[#allocation2 + $0x144] ss:$16 sps:$4 sm:$0xff]  }
  0x96   :  { %966 = vmatpush1.bf16.msra.mxu0 %v4229_v14  ;;  %1048 = vmatpush1.bf16.msra.mxu1 %v4230_v15  ;;  %v4269_v41 = vld [vmem:[#allocation2 + $0x14c] ss:$16 sps:$4 sm:$0xff]   ;;  %v4271_v42 = vld [vmem:[#allocation2 + $0x140] ss:$16 sps:$4 sm:$0xff]   ;;  %v4272_v43 = vld [vmem:[#allocation2 + $0x148] ss:$16 sps:$4 sm:$0xff]  }
  0x97   :  { %967 = vmatprep.subr.bf16.mxu0 %v4231_v16  ;;  %1049 = vmatprep.subr.bf16.mxu1 %v4233_v17  ;;  %v4273_v44 = vld [vmem:[#allocation2 + $0x164] ss:$16 sps:$4 sm:$0xff]   ;;  %v4275_v45 = vld [vmem:[#allocation2 + $0x16c] ss:$16 sps:$4 sm:$0xff]   ;;  %s5422_s21 = sld [smem:[#allocation20_spill]]  ;;  %vm5043_vm0 = vmmov 0  }
  0x98   :  { %v4277_v47 = vld [vmem:[#allocation2 + $0x160] ss:$16 sps:$4 sm:$0xff]   ;;  %v4278_v49 = vld [vmem:[#allocation2 + $0x168] ss:$16 sps:$4 sm:$0xff]   ;;  %v4279_v50 = vld [vmem:[#allocation2 + $0x184] ss:$16 sps:$4 sm:$0xff]  }
  0x99   :  { %v4281_v51 = vld [vmem:[#allocation2 + $0x18c] ss:$16 sps:$4 sm:$0xff]   ;;  %v4283_v52 = vld [vmem:[#allocation2 + $0x180] ss:$16 sps:$4 sm:$0xff]   ;;  %v4284_v53 = vld [vmem:[#allocation2 + $0x188] ss:$16 sps:$4 sm:$0xff]  }
  0x9a   :  { %968 = vmatpush1.bf16.msra.mxu0 %v4235_v18  ;;  %1050 = vmatpush1.bf16.msra.mxu1 %v4236_v19  ;;  %v4285_v54 = vld [vmem:[#allocation2 + $0x1a4] ss:$16 sps:$4 sm:$0xff]   ;;  %v4287_v55 = vld [vmem:[#allocation2 + $0x1ac] ss:$16 sps:$4 sm:$0xff]   ;;  %v4289_v56 = vld [vmem:[#allocation2 + $0x1a0] ss:$16 sps:$4 sm:$0xff]  }
  0x9b   :  { %969 = vmatprep.subr.bf16.mxu0 %v4237_v20  ;;  %1051 = vmatprep.subr.bf16.mxu1 %v4239_v21  ;;  %v4290_v57 = vld [vmem:[#allocation2 + $0x1a8] ss:$16 sps:$4 sm:$0xff]   ;;  %v4291_v58 = vld [vmem:[#allocation2 + $0x1c4] ss:$16 sps:$4 sm:$0xff]   ;;  %v4293_v59 = vld [vmem:[#allocation2 + $0x1cc] ss:$16 sps:$4 sm:$0xff]  }
  0x9c   :  { %v4295_v60 = vld [vmem:[#allocation2 + $0x1c0] ss:$16 sps:$4 sm:$0xff]   ;;  %v4296_v61 = vld [vmem:[#allocation2 + $0x1c8] ss:$16 sps:$4 sm:$0xff]   ;;  %v4297_v62 = vld [vmem:[#allocation2 + $0x1e4] ss:$16 sps:$4 sm:$0xff]  }
  0x9d   :  { %v153_v46 = vld [vmem:[%s5422_s21] sm:$0xff]  ;;  %v4299_v63 = vld [vmem:[#allocation2 + $0x1ec] ss:$16 sps:$4 sm:$0xff]   ;;  %v4302_v1 = vld [vmem:[#allocation2 + $0x1e8] ss:$16 sps:$4 sm:$0xff]   ;;  %s5045_s23 = smov [#allocation14]  }
  0x9e   :  { %970 = vmatpush1.bf16.msra.mxu0 %v4241_v22  ;;  %1052 = vmatpush1.bf16.msra.mxu1 %v4242_v23  ;;  %v3642_v48 = vcombine.high %v153_v46, %v153_v46  ;;  %v4301_v0 = vld [vmem:[#allocation2 + $0x1e0] ss:$16 sps:$4 sm:$0xff]   ;;  %v4307_v2 = vld [vmem:[#allocation2 + $0x204] ss:$16 sps:$4 sm:$0xff]   ;;  %v4310_v3 = vld [vmem:[#allocation2 + $0x20c] ss:$16 sps:$4 sm:$0xff]   ;;  %v3641_v4 = vcombine.low %v153_v46, %v153_v46 }
  0x9f   :  { %971 = vmatprep.subr.bf16.mxu0 %v4243_v24  ;;  %1053 = vmatprep.subr.bf16.mxu1 %v4245_v25  ;;  %v4305_v5 = vld [vmem:[#allocation2 + $0x200] ss:$16 sps:$4 sm:$0xff]   ;;  %v4308_v6 = vld [vmem:[#allocation2 + $0x208] ss:$16 sps:$4 sm:$0xff]   ;;  %v4313_v7 = vld [vmem:[#allocation2 + $0x224] ss:$16 sps:$4 sm:$0xff]  }
  0xa0   :  { %991 = vmatprep.mubr.bf16.mxu0 %v3642_v48  ;;  %1073 = vmatprep.mubr.bf16.mxu1 %v3642_v48  ;;  %v4316_v8 = vld [vmem:[#allocation2 + $0x22c] ss:$16 sps:$4 sm:$0xff]   ;;  %v4311_v9 = vld [vmem:[#allocation2 + $0x220] ss:$16 sps:$4 sm:$0xff]   ;;  %v4314_v10 = vld [vmem:[#allocation2 + $0x228] ss:$16 sps:$4 sm:$0xff]  }
  0xa1   :  { %v4319_v11 = vld [vmem:[#allocation2 + $0x244] ss:$16 sps:$4 sm:$0xff]   ;;  %v4322_v12 = vld [vmem:[#allocation2 + $0x24c] ss:$16 sps:$4 sm:$0xff]   ;;  %v4317_v13 = vld [vmem:[#allocation2 + $0x240] ss:$16 sps:$4 sm:$0xff]  }
  0xa2   :  { %972 = vmatpush1.bf16.msra.mxu0 %v4247_v26  ;;  %1054 = vmatpush1.bf16.msra.mxu1 %v4248_v27  ;;  %v4320_v14 = vld [vmem:[#allocation2 + $0x248] ss:$16 sps:$4 sm:$0xff]   ;;  %v4325_v15 = vld [vmem:[#allocation2 + $0x264] ss:$16 sps:$4 sm:$0xff]   ;;  %v4328_v16 = vld [vmem:[#allocation2 + $0x26c] ss:$16 sps:$4 sm:$0xff]  }
  0xa3   :  { %973 = vmatprep.subr.bf16.mxu0 %v4249_v28  ;;  %1055 = vmatprep.subr.bf16.mxu1 %v4251_v29  ;;  %v4323_v17 = vld [vmem:[#allocation2 + $0x260] ss:$16 sps:$4 sm:$0xff]   ;;  %v4326_v18 = vld [vmem:[#allocation2 + $0x268] ss:$16 sps:$4 sm:$0xff]   ;;  %v4331_v19 = vld [vmem:[#allocation2 + $0x284] ss:$16 sps:$4 sm:$0xff]  }
  0xa4   :  { %v4334_v20 = vld [vmem:[#allocation2 + $0x28c] ss:$16 sps:$4 sm:$0xff]   ;;  %v4329_v21 = vld [vmem:[#allocation2 + $0x280] ss:$16 sps:$4 sm:$0xff]   ;;  %v4332_v22 = vld [vmem:[#allocation2 + $0x288] ss:$16 sps:$4 sm:$0xff]  }
  0xa5   :  { %v4337_v23 = vld [vmem:[#allocation2 + $0x2a4] ss:$16 sps:$4 sm:$0xff]   ;;  %v4340_v24 = vld [vmem:[#allocation2 + $0x2ac] ss:$16 sps:$4 sm:$0xff]   ;;  %v4335_v25 = vld [vmem:[#allocation2 + $0x2a0] ss:$16 sps:$4 sm:$0xff]  }
  0xa6   :  { %974 = vmatpush1.bf16.msra.mxu0 %v4253_v30  ;;  %1056 = vmatpush1.bf16.msra.mxu1 %v4254_v31  ;;  %v4338_v26 = vld [vmem:[#allocation2 + $0x2a8] ss:$16 sps:$4 sm:$0xff]   ;;  %v4343_v27 = vld [vmem:[#allocation2 + $0x2c4] ss:$16 sps:$4 sm:$0xff]   ;;  %v4346_v28 = vld [vmem:[#allocation2 + $0x2cc] ss:$16 sps:$4 sm:$0xff]  }
  0xa7   :  { %975 = vmatprep.subr.bf16.mxu0 %v4255_v32  ;;  %1057 = vmatprep.subr.bf16.mxu1 %v4257_v33  ;;  %v5261_v29 = vld [vmem:[%s5422_s21 + $0x8] sm:$0xff]  ;;  %v4341_v31 = vld [vmem:[#allocation2 + $0x2c0] ss:$16 sps:$4 sm:$0xff]   ;;  %v4349_v33 = vld [vmem:[#allocation2 + $0x2e4] ss:$16 sps:$4 sm:$0xff]   ;;  %s3629_s9 = sshll.u32 %s5045_s23, 4  ;;  %s3630_s9 = int_to_ptr.vmem [resolvable:$true] %s3629_s9 }
  0xa8   :  { %v3644_v30 = vcombine.high %v5261_v29, %v5261_v29  ;;  %v4344_v32 = vld [vmem:[#allocation2 + $0x2c8] ss:$16 sps:$4 sm:$0xff]   ;;  %v4370_v46 = vld [vmem:[#allocation2 + $0x34c] ss:$16 sps:$4 sm:$0xff]   ;;  %p5002_p1 = scmp.lt.s32.totalorder %s3630_s9, %s3630_s9 }
  0xa9   :  { %v4368_v48 = vld [vmem:[#allocation2 + $0x348] ss:$16 sps:$4 sm:$0xff]  }
  0xaa   :  { %976 = vmatpush1.bf16.msra.mxu0 %v4259_v34  ;;  %1058 = vmatpush1.bf16.msra.mxu1 %v4260_v35  ;;  %v4352_v34 = vld [vmem:[#allocation2 + $0x2ec] ss:$16 sps:$4 sm:$0xff]   ;;  %v4347_v35 = vld [vmem:[#allocation2 + $0x2e0] ss:$16 sps:$4 sm:$0xff]  }
  0xab   :  { %977 = vmatprep.subr.bf16.mxu0 %v4261_v36  ;;  %1059 = vmatprep.subr.bf16.mxu1 %v4263_v37  ;;  %v4350_v36 = vld [vmem:[#allocation2 + $0x2e8] ss:$16 sps:$4 sm:$0xff]   ;;  %v4355_v37 = vld [vmem:[#allocation2 + $0x304] ss:$16 sps:$4 sm:$0xff]  }
  0xae   :  { %978 = vmatpush1.bf16.msra.mxu0 %v4265_v38  ;;  %1060 = vmatpush1.bf16.msra.mxu1 %v4266_v39  ;;  %v4358_v38 = vld [vmem:[#allocation2 + $0x30c] ss:$16 sps:$4 sm:$0xff]   ;;  %v4353_v39 = vld [vmem:[#allocation2 + $0x300] ss:$16 sps:$4 sm:$0xff]  }
  0xaf   :  { %979 = vmatprep.subr.bf16.mxu0 %v4267_v40  ;;  %1061 = vmatprep.subr.bf16.mxu1 %v4269_v41  ;;  %v4356_v40 = vld [vmem:[#allocation2 + $0x308] ss:$16 sps:$4 sm:$0xff]   ;;  %v4361_v41 = vld [vmem:[#allocation2 + $0x324] ss:$16 sps:$4 sm:$0xff]  }
  0xb2   :  { %980 = vmatpush1.bf16.msra.mxu0 %v4271_v42  ;;  %1062 = vmatpush1.bf16.msra.mxu1 %v4272_v43  ;;  %v4364_v42 = vld [vmem:[#allocation2 + $0x32c] ss:$16 sps:$4 sm:$0xff]   ;;  %v4359_v43 = vld [vmem:[#allocation2 + $0x320] ss:$16 sps:$4 sm:$0xff]  }
  0xb3   :  { %981 = vmatprep.subr.bf16.mxu0 %v4273_v44  ;;  %1063 = vmatprep.subr.bf16.mxu1 %v4275_v45  ;;  %v4362_v44 = vld [vmem:[#allocation2 + $0x328] ss:$16 sps:$4 sm:$0xff]   ;;  %v4367_v45 = vld [vmem:[#allocation2 + $0x344] ss:$16 sps:$4 sm:$0xff]  }
  0xb6   :  { %982 = vmatpush1.bf16.msra.mxu0 %v4277_v47  ;;  %1064 = vmatpush1.bf16.msra.mxu1 %v4278_v49  ;;  %v4365_v47 = vld [vmem:[#allocation2 + $0x340] ss:$16 sps:$4 sm:$0xff]   ;;  %v4373_v49 = vld [vmem:[#allocation2 + $0x364] ss:$16 sps:$4 sm:$0xff]  }
  0xb7   :  { %983 = vmatprep.subr.bf16.mxu0 %v4279_v50  ;;  %1065 = vmatprep.subr.bf16.mxu1 %v4281_v51  ;;  %v4376_v50 = vld [vmem:[#allocation2 + $0x36c] ss:$16 sps:$4 sm:$0xff]   ;;  %v4371_v51 = vld [vmem:[#allocation2 + $0x360] ss:$16 sps:$4 sm:$0xff]  }
  0xba   :  { %984 = vmatpush1.bf16.msra.mxu0 %v4283_v52  ;;  %1066 = vmatpush1.bf16.msra.mxu1 %v4284_v53  ;;  %v4374_v52 = vld [vmem:[#allocation2 + $0x368] ss:$16 sps:$4 sm:$0xff]   ;;  %v4379_v53 = vld [vmem:[#allocation2 + $0x384] ss:$16 sps:$4 sm:$0xff]  }
  0xbb   :  { %985 = vmatprep.subr.bf16.mxu0 %v4285_v54  ;;  %1067 = vmatprep.subr.bf16.mxu1 %v4287_v55  ;;  %v4382_v54 = vld [vmem:[#allocation2 + $0x38c] ss:$16 sps:$4 sm:$0xff]   ;;  %v4377_v55 = vld [vmem:[#allocation2 + $0x380] ss:$16 sps:$4 sm:$0xff]  }
  0xbe   :  { %986 = vmatpush1.bf16.msra.mxu0 %v4289_v56  ;;  %1068 = vmatpush1.bf16.msra.mxu1 %v4290_v57  ;;  %v4380_v56 = vld [vmem:[#allocation2 + $0x388] ss:$16 sps:$4 sm:$0xff]   ;;  %v4385_v57 = vld [vmem:[#allocation2 + $0x3a4] ss:$16 sps:$4 sm:$0xff]  }
  0xbf   :  { %987 = vmatprep.subr.bf16.mxu0 %v4291_v58  ;;  %1069 = vmatprep.subr.bf16.mxu1 %v4293_v59  ;;  %v4388_v58 = vld [vmem:[#allocation2 + $0x3ac] ss:$16 sps:$4 sm:$0xff]   ;;  %v4383_v59 = vld [vmem:[#allocation2 + $0x3a0] ss:$16 sps:$4 sm:$0xff]  }
  0xc2   :  { %988 = vmatpush1.bf16.msra.mxu0 %v4295_v60  ;;  %1070 = vmatpush1.bf16.msra.mxu1 %v4296_v61  ;;  %v4386_v60 = vld [vmem:[#allocation2 + $0x3a8] ss:$16 sps:$4 sm:$0xff]   ;;  %v4391_v61 = vld [vmem:[#allocation2 + $0x3c4] ss:$16 sps:$4 sm:$0xff]  }
  0xc3   :  { %989 = vmatprep.subr.bf16.mxu0 %v4297_v62  ;;  %1071 = vmatprep.subr.bf16.mxu1 %v4299_v63  ;;  %v4394_v62 = vld [vmem:[#allocation2 + $0x3cc] ss:$16 sps:$4 sm:$0xff]   ;;  %v4389_v63 = vld [vmem:[#allocation2 + $0x3c0] ss:$16 sps:$4 sm:$0xff]  }
  0xc6   :  { %990 = vmatpush1.bf16.msra.mxu0 %v4301_v0  ;;  %1072 = vmatpush1.bf16.msra.mxu1 %v4302_v1  ;;  %v4392_v0 = vld [vmem:[#allocation2 + $0x3c8] ss:$16 sps:$4 sm:$0xff]   ;;  %v4397_v1 = vld [vmem:[#allocation2 + $0x3e4] ss:$16 sps:$4 sm:$0xff]  }
  0xc7   :  { %1000 = vmatprep.subr.bf16.mxu0 %v4307_v2  ;;  %1082 = vmatprep.subr.bf16.mxu1 %v4310_v3  ;;  %v4400_v2 = vld [vmem:[#allocation2 + $0x3ec] ss:$16 sps:$4 sm:$0xff]   ;;  %v4395_v3 = vld [vmem:[#allocation2 + $0x3e0] ss:$16 sps:$4 sm:$0xff]  }
  0xc9   :  { %992 = vmatmul.mubr.bf16.vlgmr.msra.gmra.mrb[0].mxu0 %v3641_v4  ;;  %1074 = vmatmul.mubr.bf16.vlgmr.msra.gmra.mrb[0].mxu1 %v3641_v4  ;;  %v4398_v4 = vld [vmem:[#allocation2 + $0x3e8] ss:$16 sps:$4 sm:$0xff]  }
  0xca   :  { %1001 = vmatpush1.bf16.msra.mxu0 %v4305_v5  ;;  %1083 = vmatpush1.bf16.msra.mxu1 %v4308_v6  ;;  %v4405_v5 = vld [vmem:[#allocation5 + $0x4] ss:$8 sps:$4 sm:$0xff]   ;;  %v4403_v6 = vld [vmem:[#allocation5] ss:$8 sps:$4 sm:$0xff]  }
  0xcb   :  { %1002 = vmatprep.subr.bf16.mxu0 %v4313_v7  ;;  %1084 = vmatprep.subr.bf16.mxu1 %v4316_v8  ;;  %v3643_v7 = vcombine.low %v5261_v29, %v5261_v29  ;;  %v4408_v8 = vld [vmem:[#allocation5 + $0x14] ss:$8 sps:$4 sm:$0xff]   ;;  %v4436_v29 = vld [vmem:[#allocation5 + $0xb0] ss:$8 sps:$4 sm:$0xff]  }
  0xcc   :  { %1032 = vmatprep.mubr.bf16.mxu0 %v3644_v30  ;;  %1114 = vmatprep.mubr.bf16.mxu1 %v3644_v30  ;;  %v4441_v30 = vld [vmem:[#allocation5 + $0xc4] ss:$8 sps:$4 sm:$0xff]  }
  0xce   :  { %1003 = vmatpush1.bf16.msra.mxu0 %v4311_v9  ;;  %1085 = vmatpush1.bf16.msra.mxu1 %v4314_v10  ;;  %v4406_v9 = vld [vmem:[#allocation5 + $0x10] ss:$8 sps:$4 sm:$0xff]   ;;  %v4411_v10 = vld [vmem:[#allocation5 + $0x24] ss:$8 sps:$4 sm:$0xff]  }
  0xcf   :  { %1004 = vmatprep.subr.bf16.mxu0 %v4319_v11  ;;  %1086 = vmatprep.subr.bf16.mxu1 %v4322_v12  ;;  %v4409_v11 = vld [vmem:[#allocation5 + $0x20] ss:$8 sps:$4 sm:$0xff]   ;;  %v4414_v12 = vld [vmem:[#allocation5 + $0x34] ss:$8 sps:$4 sm:$0xff]  }
  0xd2   :  { %1005 = vmatpush1.bf16.msra.mxu0 %v4317_v13  ;;  %1087 = vmatpush1.bf16.msra.mxu1 %v4320_v14  ;;  %v4412_v13 = vld [vmem:[#allocation5 + $0x30] ss:$8 sps:$4 sm:$0xff]   ;;  %v4417_v14 = vld [vmem:[#allocation5 + $0x44] ss:$8 sps:$4 sm:$0xff]  }
  0xd3   :  { %1006 = vmatprep.subr.bf16.mxu0 %v4325_v15  ;;  %1088 = vmatprep.subr.bf16.mxu1 %v4328_v16  ;;  %v4415_v15 = vld [vmem:[#allocation5 + $0x40] ss:$8 sps:$4 sm:$0xff]   ;;  %v4420_v16 = vld [vmem:[#allocation5 + $0x54] ss:$8 sps:$4 sm:$0xff]  }
  0xd6   :  { %1007 = vmatpush1.bf16.msra.mxu0 %v4323_v17  ;;  %1089 = vmatpush1.bf16.msra.mxu1 %v4326_v18  ;;  %v4418_v17 = vld [vmem:[#allocation5 + $0x50] ss:$8 sps:$4 sm:$0xff]   ;;  %v4423_v18 = vld [vmem:[#allocation5 + $0x64] ss:$8 sps:$4 sm:$0xff]  }
  0xd7   :  { %1008 = vmatprep.subr.bf16.mxu0 %v4331_v19  ;;  %1090 = vmatprep.subr.bf16.mxu1 %v4334_v20  ;;  %v4421_v19 = vld [vmem:[#allocation5 + $0x60] ss:$8 sps:$4 sm:$0xff]   ;;  %v4426_v20 = vld [vmem:[#allocation5 + $0x74] ss:$8 sps:$4 sm:$0xff]  }
  0xda   :  { %1009 = vmatpush1.bf16.msra.mxu0 %v4329_v21  ;;  %1091 = vmatpush1.bf16.msra.mxu1 %v4332_v22  ;;  %v4424_v21 = vld [vmem:[#allocation5 + $0x70] ss:$8 sps:$4 sm:$0xff]   ;;  %v4429_v22 = vld [vmem:[#allocation5 + $0x84] ss:$8 sps:$4 sm:$0xff]  }
  0xdb   :  { %1010 = vmatprep.subr.bf16.mxu0 %v4337_v23  ;;  %1092 = vmatprep.subr.bf16.mxu1 %v4340_v24  ;;  %v4427_v23 = vld [vmem:[#allocation5 + $0x80] ss:$8 sps:$4 sm:$0xff]   ;;  %v4432_v24 = vld [vmem:[#allocation5 + $0x94] ss:$8 sps:$4 sm:$0xff]  }
  0xde   :  { %1011 = vmatpush1.bf16.msra.mxu0 %v4335_v25  ;;  %1093 = vmatpush1.bf16.msra.mxu1 %v4338_v26  ;;  %v4430_v25 = vld [vmem:[#allocation5 + $0x90] ss:$8 sps:$4 sm:$0xff]   ;;  %v4435_v26 = vld [vmem:[#allocation5 + $0xa4] ss:$8 sps:$4 sm:$0xff]  }
  0xdf   :  { %1012 = vmatprep.subr.bf16.mxu0 %v4343_v27  ;;  %1094 = vmatprep.subr.bf16.mxu1 %v4346_v28  ;;  %v4433_v27 = vld [vmem:[#allocation5 + $0xa0] ss:$8 sps:$4 sm:$0xff]   ;;  %v4438_v28 = vld [vmem:[#allocation5 + $0xb4] ss:$8 sps:$4 sm:$0xff]  }
  0xe2   :  { %1013 = vmatpush1.bf16.msra.mxu0 %v4341_v31  ;;  %1095 = vmatpush1.bf16.msra.mxu1 %v4344_v32  ;;  %v4439_v31 = vld [vmem:[#allocation5 + $0xc0] ss:$8 sps:$4 sm:$0xff]   ;;  %v4444_v32 = vld [vmem:[#allocation5 + $0xd4] ss:$8 sps:$4 sm:$0xff]  }
  0xe3   :  { %1014 = vmatprep.subr.bf16.mxu0 %v4349_v33  ;;  %1096 = vmatprep.subr.bf16.mxu1 %v4352_v34  ;;  %v4442_v33 = vld [vmem:[#allocation5 + $0xd0] ss:$8 sps:$4 sm:$0xff]   ;;  %v4447_v34 = vld [vmem:[#allocation5 + $0xe4] ss:$8 sps:$4 sm:$0xff]  }
  0xe6   :  { %1015 = vmatpush1.bf16.msra.mxu0 %v4347_v35  ;;  %1097 = vmatpush1.bf16.msra.mxu1 %v4350_v36  ;;  %v4445_v35 = vld [vmem:[#allocation5 + $0xe0] ss:$8 sps:$4 sm:$0xff]   ;;  %v4450_v36 = vld [vmem:[#allocation5 + $0xf4] ss:$8 sps:$4 sm:$0xff]  }
  0xe7   :  { %1016 = vmatprep.subr.bf16.mxu0 %v4355_v37  ;;  %1098 = vmatprep.subr.bf16.mxu1 %v4358_v38  ;;  %v4448_v37 = vld [vmem:[#allocation5 + $0xf0] ss:$8 sps:$4 sm:$0xff]   ;;  %v4453_v38 = vld [vmem:[#allocation5 + $0x104] ss:$8 sps:$4 sm:$0xff]  }
  0xea   :  { %1017 = vmatpush1.bf16.msra.mxu0 %v4353_v39  ;;  %1099 = vmatpush1.bf16.msra.mxu1 %v4356_v40  ;;  %v4499_v39 = vld [vmem:[#allocation7 + $0x40] sm:$0xff]  }
  0xeb   :  { %1018 = vmatprep.subr.bf16.mxu0 %v4361_v41  ;;  %1100 = vmatprep.subr.bf16.mxu1 %v4364_v42  ;;  %v4500_v40 = vld [vmem:[#allocation7] sm:$0xff]   ;;  %v4501_v41 = vld [vmem:[#allocation7 + $0x48] sm:$0xff]  }
  0xec   :  { %v4502_v42 = vld [vmem:[#allocation7 + $0x8] sm:$0xff]  }
  0xee   :  { %1019 = vmatpush1.bf16.msra.mxu0 %v4359_v43  ;;  %1101 = vmatpush1.bf16.msra.mxu1 %v4362_v44  ;;  %v4503_v43 = vld [vmem:[#allocation7 + $0x50] sm:$0xff]  }
  0xef   :  { %1020 = vmatprep.subr.bf16.mxu0 %v4367_v45  ;;  %1102 = vmatprep.subr.bf16.mxu1 %v4370_v46  ;;  %v4504_v44 = vld [vmem:[#allocation7 + $0x10] sm:$0xff]   ;;  %v4505_v45 = vld [vmem:[#allocation7 + $0x58] sm:$0xff]  }
  0xf0   :  { %v4506_v46 = vld [vmem:[#allocation7 + $0x18] sm:$0xff]  }
  0xf2   :  { %1021 = vmatpush1.bf16.msra.mxu0 %v4365_v47  ;;  %1103 = vmatpush1.bf16.msra.mxu1 %v4368_v48  ;;  %v4507_v47 = vld [vmem:[#allocation7 + $0x60] sm:$0xff]  }
  0xf3   :  { %1022 = vmatprep.subr.bf16.mxu0 %v4373_v49  ;;  %1104 = vmatprep.subr.bf16.mxu1 %v4376_v50  ;;  %v4508_v48 = vld [vmem:[#allocation7 + $0x20] sm:$0xff]   ;;  %v4509_v49 = vld [vmem:[#allocation7 + $0x68] sm:$0xff]  }
  0xf4   :  { %v4510_v50 = vld [vmem:[#allocation7 + $0x28] sm:$0xff]  }
  0xf6   :  { %1023 = vmatpush1.bf16.msra.mxu0 %v4371_v51  ;;  %1105 = vmatpush1.bf16.msra.mxu1 %v4374_v52  ;;  %v285_v51 = vlaneseq }
  0xf7   :  { %1024 = vmatprep.subr.bf16.mxu0 %v4379_v53  ;;  %1106 = vmatprep.subr.bf16.mxu1 %v4382_v54  ;;  %v5275_v54 = vld [vmem:[%s5395_s2] sm:$0xf] }
  0xf8   :  { %v5267_v52 = vshrl.u32 %v285_v51, 7  ;;  %v4513_v51 = vld [vmem:[#allocation7 + $0x78] sm:$0xff]  }
  0xfa   :  { %1025 = vmatpush1.bf16.msra.mxu0 %v4377_v55  ;;  %1107 = vmatpush1.bf16.msra.mxu1 %v4380_v56  ;;  %v5270_v53 = vsub.s32 0, %v5267_v52  ;;  %v5278_v55 = vsub.s32 1, %v5267_v52  ;;  %v5281_v56 = vsub.s32 3, %v5267_v52 }
  0xfb   :  { %1026 = vmatprep.subr.bf16.mxu0 %v4385_v57  ;;  %1108 = vmatprep.subr.bf16.mxu1 %v4388_v58 }
  0xfc   :  { %v288_v57 = vrot.slane %v5275_v54, %v5270_v53  ;;  %v292_v58 = vrot.slane %v5275_v54, %v5278_v55 }
  0xfe   :  { %1027 = vmatpush1.bf16.msra.mxu0 %v4383_v59  ;;  %1109 = vmatpush1.bf16.msra.mxu1 %v4386_v60  ;;  %v300_v59 = vrot.slane %v5275_v54, %v5281_v56 }
  0xff   :  { %1028 = vmatprep.subr.bf16.mxu0 %v4391_v61  ;;  %1110 = vmatprep.subr.bf16.mxu1 %v4394_v62 }
 0x102   :  { %1029 = vmatpush1.bf16.msra.mxu0 %v4389_v63  ;;  %1111 = vmatpush1.bf16.msra.mxu1 %v4392_v0 }
 0x103   :  { %1030 = vmatprep.subr.bf16.mxu0 %v4397_v1  ;;  %1112 = vmatprep.subr.bf16.mxu1 %v4400_v2 }
 0x106   :  { %1031 = vmatpush1.bf16.msra.mxu0 %v4395_v3  ;;  %1113 = vmatpush1.bf16.msra.mxu1 %v4398_v4 }
 0x107   :  { %1527 = vmatprep.subr.bf16.mxu0 %v4405_v5  ;;  %4080 = vmatprep.subr.bf16.mxu1 %v4499_v39  ;;  %v4492_v39 = vld [vmem:[#allocation5 + $0x1d4] ss:$8 sps:$4 sm:$0xff]  }
 0x109   :  { %1033 = vmatmul.mubr.bf16.vlgmr.msra.gmra.mrb[0].mxu0 %v3643_v7  ;;  %1115 = vmatmul.mubr.bf16.vlgmr.msra.gmra.mrb[0].mxu1 %v3643_v7 }
 0x10a   :  { %1528 = vmatpush1.bf16.msra.mxu0 %v4403_v6  ;;  %4081 = vmatpush3.bf16.msra.mxu1 %v4500_v40  ;;  %v4490_v40 = vld [vmem:[#allocation5 + $0x1d0] ss:$8 sps:$4 sm:$0xff]  }
 0x10b   :  { %1529 = vmatprep.subr.bf16.mxu0 %v4408_v8  ;;  %4082 = vmatprep.subr.bf16.mxu1 %v4501_v41 }
 0x10e   :  { %1530 = vmatpush1.bf16.msra.mxu0 %v4406_v9  ;;  %4083 = vmatpush3.bf16.msra.mxu1 %v4502_v42  ;;  %v4495_v42 = vld [vmem:[#allocation5 + $0x1e4] ss:$8 sps:$4 sm:$0xff]  }
 0x10f   :  { %1531 = vmatprep.subr.bf16.mxu0 %v4411_v10  ;;  %4084 = vmatprep.subr.bf16.mxu1 %v4503_v43  ;;  %v4493_v43 = vld [vmem:[#allocation5 + $0x1e0] ss:$8 sps:$4 sm:$0xff]  }
 0x112   :  { %1532 = vmatpush1.bf16.msra.mxu0 %v4409_v11  ;;  %4085 = vmatpush3.bf16.msra.mxu1 %v4504_v44  ;;  %v4451_v11 = vld [vmem:[#allocation5 + $0x100] ss:$8 sps:$4 sm:$0xff]  }
 0x113   :  { %1533 = vmatprep.subr.bf16.mxu0 %v4414_v12  ;;  %4086 = vmatprep.subr.bf16.mxu1 %v4505_v45  ;;  %v4498_v45 = vld [vmem:[#allocation5 + $0x1f4] ss:$8 sps:$4 sm:$0xff]  }
 0x116   :  { %1534 = vmatpush1.bf16.msra.mxu0 %v4412_v13  ;;  %4087 = vmatpush3.bf16.msra.mxu1 %v4506_v46  ;;  %v4456_v13 = vld [vmem:[#allocation5 + $0x114] ss:$8 sps:$4 sm:$0xff]   ;;  %v4496_v46 = vld [vmem:[#allocation5 + $0x1f0] ss:$8 sps:$4 sm:$0xff]  }
 0x117   :  { %1535 = vmatprep.subr.bf16.mxu0 %v4417_v14  ;;  %4088 = vmatprep.subr.bf16.mxu1 %v4507_v47 }
 0x11a   :  { %1536 = vmatpush1.bf16.msra.mxu0 %v4415_v15  ;;  %4089 = vmatpush3.bf16.msra.mxu1 %v4508_v48  ;;  %v4454_v15 = vld [vmem:[#allocation5 + $0x110] ss:$8 sps:$4 sm:$0xff]  }
 0x11b   :  { %1537 = vmatprep.subr.bf16.mxu0 %v4420_v16  ;;  %4090 = vmatprep.subr.bf16.mxu1 %v4509_v49  ;;  %v4459_v16 = vld [vmem:[#allocation5 + $0x124] ss:$8 sps:$4 sm:$0xff]   ;;  %v4511_v49 = vld [vmem:[#allocation7 + $0x70] sm:$0xff]  }
 0x11e   :  { %1538 = vmatpush1.bf16.msra.mxu0 %v4418_v17  ;;  %4091 = vmatpush3.bf16.msra.mxu1 %v4510_v50  ;;  %v4457_v17 = vld [vmem:[#allocation5 + $0x120] ss:$8 sps:$4 sm:$0xff]   ;;  %v4512_v50 = vld [vmem:[#allocation7 + $0x30] sm:$0xff]  }
 0x11f   :  { %1539 = vmatprep.subr.bf16.mxu0 %v4423_v18  ;;  %v4462_v18 = vld [vmem:[#allocation5 + $0x134] ss:$8 sps:$4 sm:$0xff]   ;;  %4092 = vmatprep.subr.bf16.mxu1 %v4511_v49  ;;  %v4543_v49 = vld [vmem:[#allocation10 + $0x40] ss:$8 sps:$4 sm:$0xff]  }
 0x122   :  { %1540 = vmatpush1.bf16.msra.mxu0 %v4421_v19  ;;  %v4460_v19 = vld [vmem:[#allocation5 + $0x130] ss:$8 sps:$4 sm:$0xff]   ;;  %4093 = vmatpush3.bf16.msra.mxu1 %v4512_v50  ;;  %v4548_v50 = vld [vmem:[#allocation10 + $0x54] ss:$8 sps:$4 sm:$0xff]  }
 0x123   :  { %1541 = vmatprep.subr.bf16.mxu0 %v4426_v20  ;;  %v4465_v20 = vld [vmem:[#allocation5 + $0x144] ss:$8 sps:$4 sm:$0xff]   ;;  %4094 = vmatprep.subr.bf16.mxu1 %v4513_v51  ;;  %v4546_v51 = vld [vmem:[#allocation10 + $0x50] ss:$8 sps:$4 sm:$0xff]  }
 0x126   :  { %1542 = vmatpush1.bf16.msra.mxu0 %v4424_v21  ;;  %v4463_v21 = vld [vmem:[#allocation5 + $0x140] ss:$8 sps:$4 sm:$0xff]  }
 0x127   :  { %1543 = vmatprep.subr.bf16.mxu0 %v4429_v22  ;;  %v4468_v22 = vld [vmem:[#allocation5 + $0x154] ss:$8 sps:$4 sm:$0xff]  }
 0x12a   :  { %1544 = vmatpush1.bf16.msra.mxu0 %v4427_v23  ;;  %v4466_v23 = vld [vmem:[#allocation5 + $0x150] ss:$8 sps:$4 sm:$0xff]  }
 0x12b   :  { %1545 = vmatprep.subr.bf16.mxu0 %v4432_v24  ;;  %v4471_v24 = vld [vmem:[#allocation5 + $0x164] ss:$8 sps:$4 sm:$0xff]  }
 0x12e   :  { %1546 = vmatpush1.bf16.msra.mxu0 %v4430_v25  ;;  %v4469_v25 = vld [vmem:[#allocation5 + $0x160] ss:$8 sps:$4 sm:$0xff]  }
 0x12f   :  { %1547 = vmatprep.subr.bf16.mxu0 %v4435_v26  ;;  %v4474_v26 = vld [vmem:[#allocation5 + $0x174] ss:$8 sps:$4 sm:$0xff]  }
 0x132   :  { %1548 = vmatpush1.bf16.msra.mxu0 %v4433_v27  ;;  %v4472_v27 = vld [vmem:[#allocation5 + $0x170] ss:$8 sps:$4 sm:$0xff]  }
 0x133   :  { %1549 = vmatprep.subr.bf16.mxu0 %v4438_v28  ;;  %v4477_v28 = vld [vmem:[#allocation5 + $0x184] ss:$8 sps:$4 sm:$0xff]  }
 0x136   :  { %1550 = vmatpush1.bf16.msra.mxu0 %v4436_v29  ;;  %v4475_v29 = vld [vmem:[#allocation5 + $0x180] ss:$8 sps:$4 sm:$0xff]  }
 0x137   :  { %1551 = vmatprep.subr.bf16.mxu0 %v4441_v30  ;;  %v4480_v30 = vld [vmem:[#allocation5 + $0x194] ss:$8 sps:$4 sm:$0xff]  }
 0x13a   :  { %1552 = vmatpush1.bf16.msra.mxu0 %v4439_v31  ;;  %v4478_v31 = vld [vmem:[#allocation5 + $0x190] ss:$8 sps:$4 sm:$0xff]  }
 0x13b   :  { %1553 = vmatprep.subr.bf16.mxu0 %v4444_v32  ;;  %v4483_v32 = vld [vmem:[#allocation5 + $0x1a4] ss:$8 sps:$4 sm:$0xff]  }
 0x13e   :  { %1554 = vmatpush1.bf16.msra.mxu0 %v4442_v33  ;;  %v4481_v33 = vld [vmem:[#allocation5 + $0x1a0] ss:$8 sps:$4 sm:$0xff]  }
 0x13f   :  { %1555 = vmatprep.subr.bf16.mxu0 %v4447_v34  ;;  %v4486_v34 = vld [vmem:[#allocation5 + $0x1b4] ss:$8 sps:$4 sm:$0xff]  }
 0x142   :  { %1556 = vmatpush1.bf16.msra.mxu0 %v4445_v35  ;;  %v4484_v35 = vld [vmem:[#allocation5 + $0x1b0] ss:$8 sps:$4 sm:$0xff]  }
 0x143   :  { %1557 = vmatprep.subr.bf16.mxu0 %v4450_v36  ;;  %v4489_v36 = vld [vmem:[#allocation5 + $0x1c4] ss:$8 sps:$4 sm:$0xff]  }
 0x146   :  { %1558 = vmatpush1.bf16.msra.mxu0 %v4448_v37  ;;  %v4487_v37 = vld [vmem:[#allocation5 + $0x1c0] ss:$8 sps:$4 sm:$0xff]  }
 0x147   :  { %1568 = vmatprep.subr.bf16.mxu0 %v4453_v38  ;;  %v5292_v38 = vsub.s32 2, %v5267_v52  ;;  %v4514_v52 = vld [vmem:[#allocation7 + $0x38] sm:$0xff]  }
 0x148   :  { %4095 = vmatpush3.bf16.msra.mxu1 %v4514_v52  ;;  %v4551_v52 = vld [vmem:[#allocation10 + $0x64] ss:$8 sps:$4 sm:$0xff]  }
 0x149   :  { %v296_v41 = vrot.slane %v5275_v54, %v5292_v38  ;;  %v5042_v54 = vmov 0.0  }
 0x14a   :  { %4120 = vmatprep.subr.bf16.mxu1 %v5042_v54 }
 0x1dc   :  { %v1034_v60 = vpop.f32.mrb[0].mxu0  ;;  %v5289_v61 = vpop.f32.mrb[0].mxu1 }
 0x1dd   :  { %v4160_v62 = vadd.f32 %v1034_v60, %v288_v57  ;;  %v1036_v63 = vpop.f32.mrb[1].mxu0  ;;  %v1118_v0 = vpop.f32.mrb[1].mxu1  ;;  %v4162_v44 = vadd.f32 %v5289_v61, %v296_v41  ;;  %v1195_v57 = vld [vmem:[%s5397_s4] sm:$0x3] }
 0x1de   :  { %v4161_v1 = vadd.f32 %v1036_v63, %v292_v58  ;;  %v4163_v2 = vadd.f32 %v1118_v0, %v300_v59  ;;  %v1038_v3 = vpop.f32.mrb[2].mxu0  ;;  %v1120_v4 = vpop.f32.mrb[2].mxu1  ;;  %v1200_v58 = vrot.slane %v1195_v57, %v5270_v53  ;;  %v1204_v59 = vrot.slane %v1195_v57, %v5278_v55  ;;  %v4554_v57 = vld [vmem:[#allocation10 + $0x74] ss:$8 sps:$4 sm:$0xff]  }
 0x1df   :  { %v1123_v5 = vmax.f32 %v4160_v62, 0.0  ;;  %v1039_v6 = vpop.f32.mrb[3].mxu0  ;;  %v1121_v7 = vpop.f32.mrb[3].mxu1  ;;  %v1125_v47 = vmax.f32 %v4162_v44, 0.0  ;;  %v4539_v44 = vld [vmem:[#allocation10 + $0x24] ss:$8 sps:$4 sm:$0xff]  }
 0x1e0   :  { %v1124_v8 = vmax.f32 %v4161_v1, 0.0  ;;  %v1126_v9 = vmax.f32 %v4163_v2, 0.0  ;;  %v4516_v7 = vld [vmem:[%s5400_s7 + $0x8] sm:$0xff]  }
 0x1e1   :  { %v1127_v12 = vpack.c.bf16 %v1123_v5, %v1123_v5  ;;  %v1129_v48 = vpack.c.bf16 %v1125_v47, %v1125_v47  ;;  %v4515_v5 = vld [vmem:[%s5400_s7] sm:$0xff]   ;;  %v4540_v47 = vld [vmem:[#allocation10 + $0x30] ss:$8 sps:$4 sm:$0xff]  }
 0x1e2   :  { %v1128_v10 = vpack.c.bf16 %v1124_v8, %v1124_v8  ;;  %v1130_v14 = vpack.c.bf16 %v1126_v9, %v1126_v9  ;;  %v4517_v8 = vld [vmem:[%s5400_s7 + $0x10] sm:$0xff]   ;;  %v4518_v9 = vld [vmem:[%s5400_s7 + $0x18] sm:$0xff]  }
 0x1e4   :  { %1559 = vmatprep.mubr.bf16.mxu0 %v1128_v10  ;;  %v4519_v10 = vld [vmem:[%s5400_s7 + $0x20] sm:$0xff]  }
 0x1e5   :  { %1560 = vmatmul.mubr.bf16.vlgmr.msra.gmra.mrb[4].mxu0 %v1127_v12  ;;  %v4521_v12 = vld [vmem:[%s5400_s7 + $0x30] sm:$0xff]  }
 0x1e6   :  { %1569 = vmatpush1.bf16.msra.mxu0 %v4451_v11  ;;  %1600 = vmatprep.mubr.bf16.mxu0 %v1130_v14  ;;  %v4520_v11 = vld [vmem:[%s5400_s7 + $0x28] sm:$0xff]  }
 0x1e7   :  { %1570 = vmatprep.subr.bf16.mxu0 %v4456_v13  ;;  %v4522_v13 = vld [vmem:[%s5400_s7 + $0x38] sm:$0xff]  }
 0x1ea   :  { %1571 = vmatpush1.bf16.msra.mxu0 %v4454_v15  ;;  %v3837_v15 = vld [vmem:[%s5399_s6] ss:$0 sm:$0xff] }
 0x1eb   :  { %1572 = vmatprep.subr.bf16.mxu0 %v4459_v16 }
 0x1ee   :  { %1573 = vmatpush1.bf16.msra.mxu0 %v4457_v17 }
 0x1ef   :  { %1574 = vmatprep.subr.bf16.mxu0 %v4462_v18 }
 0x1f2   :  { %1575 = vmatpush1.bf16.msra.mxu0 %v4460_v19 }
 0x1f3   :  { %1576 = vmatprep.subr.bf16.mxu0 %v4465_v20 }
 0x1f6   :  { %1577 = vmatpush1.bf16.msra.mxu0 %v4463_v21 }
 0x1f7   :  { %1578 = vmatprep.subr.bf16.mxu0 %v4468_v22  ;;  %v4523_v22 = vld [vmem:[#allocation8] sm:$0xff]  }
 0x1fa   :  { %1579 = vmatpush1.bf16.msra.mxu0 %v4466_v23 }
 0x1fb   :  { %1580 = vmatprep.subr.bf16.mxu0 %v4471_v24  ;;  %v4524_v24 = vld [vmem:[#allocation8 + $0x8] sm:$0xff]  }
 0x1fe   :  { %1581 = vmatpush1.bf16.msra.mxu0 %v4469_v25  ;;  %v4525_v25 = vld [vmem:[#allocation8 + $0x10] sm:$0xff]  }
 0x1ff   :  { %1582 = vmatprep.subr.bf16.mxu0 %v4474_v26  ;;  %v4526_v26 = vld [vmem:[#allocation8 + $0x18] sm:$0xff]  }
 0x202   :  { %1583 = vmatpush1.bf16.msra.mxu0 %v4472_v27  ;;  %v4527_v27 = vld [vmem:[#allocation8 + $0x20] sm:$0xff]  }
 0x203   :  { %1584 = vmatprep.subr.bf16.mxu0 %v4477_v28  ;;  %v4528_v28 = vld [vmem:[#allocation8 + $0x28] sm:$0xff]  }
 0x206   :  { %1585 = vmatpush1.bf16.msra.mxu0 %v4475_v29  ;;  %v4529_v29 = vld [vmem:[#allocation8 + $0x30] sm:$0xff]  }
 0x207   :  { %1586 = vmatprep.subr.bf16.mxu0 %v4480_v30  ;;  %v4530_v30 = vld [vmem:[#allocation8 + $0x38] sm:$0xff]  }
 0x20a   :  { %1587 = vmatpush1.bf16.msra.mxu0 %v4478_v31  ;;  %v4533_v31 = vld [vmem:[#allocation10 + $0x4] ss:$8 sps:$4 sm:$0xff]  }
 0x20b   :  { %1588 = vmatprep.subr.bf16.mxu0 %v4483_v32  ;;  %v3854_v32 = vld [vmem:[%s5401_s8] ss:$0 sm:$0xff] }
 0x20e   :  { %1589 = vmatpush1.bf16.msra.mxu0 %v4481_v33 }
 0x20f   :  { %1590 = vmatprep.subr.bf16.mxu0 %v4486_v34 }
 0x212   :  { %1591 = vmatpush1.bf16.msra.mxu0 %v4484_v35 }
 0x213   :  { %1592 = vmatprep.subr.bf16.mxu0 %v4489_v36 }
 0x216   :  { %1593 = vmatpush1.bf16.msra.mxu0 %v4487_v37 }
 0x217   :  { %1594 = vmatprep.subr.bf16.mxu0 %v4492_v39 }
 0x21a   :  { %1595 = vmatpush1.bf16.msra.mxu0 %v4490_v40  ;;  %v4531_v40 = vld [vmem:[#allocation10] ss:$8 sps:$4 sm:$0xff]  }
 0x21b   :  { %1596 = vmatprep.subr.bf16.mxu0 %v4495_v42  ;;  %v4536_v42 = vld [vmem:[#allocation10 + $0x14] ss:$8 sps:$4 sm:$0xff]  }
 0x21e   :  { %1597 = vmatpush1.bf16.msra.mxu0 %v4493_v43  ;;  %v4534_v43 = vld [vmem:[#allocation10 + $0x10] ss:$8 sps:$4 sm:$0xff]  }
 0x21f   :  { %1598 = vmatprep.subr.bf16.mxu0 %v4498_v45  ;;  %v4537_v45 = vld [vmem:[#allocation10 + $0x20] ss:$8 sps:$4 sm:$0xff]  }
 0x222   :  { %1599 = vmatpush1.bf16.msra.mxu0 %v4496_v46  ;;  %v4542_v46 = vld [vmem:[#allocation10 + $0x34] ss:$8 sps:$4 sm:$0xff]  }
 0x225   :  { %1601 = vmatmul.mubr.bf16.vlgmr.msra.gmra.mrb[4].mxu0 %v1129_v48  ;;  %v4545_v48 = vld [vmem:[#allocation10 + $0x44] ss:$8 sps:$4 sm:$0xff]  }
 0x2f8   :  { %v1602_v60 = vpop.f32.mrb[4].mxu0 }
 0x2f9   :  { %v4164_v61 = vadd.f32 %v1602_v60, %v1200_v58  ;;  %v1604_v62 = vpop.f32.mrb[5].mxu0  ;;  %v4552_v58 = vld [vmem:[#allocation10 + $0x70] ss:$8 sps:$4 sm:$0xff]  }
 0x2fa   :  { %v4165_v63 = vadd.f32 %v1604_v62, %v1204_v59  ;;  %v1606_v0 = vpop.f32.mrb[6].mxu0  ;;  %v5044_v59 = vmov 0   ;;  %v4555_v60 = vld [vmem:[#allocation11] ss:$16 sps:$4 sm:$0xff]   ;;  %v4560_v62 = vld [vmem:[#allocation11 + $0xc] ss:$16 sps:$4 sm:$0xff]  }
 0x2fb   :  { %v1609_v1 = vmax.f32 %v4164_v61, 0.0  ;;  %v1607_v2 = vpop.f32.mrb[7].mxu0  ;;  %v4557_v61 = vld [vmem:[#allocation11 + $0x4] ss:$16 sps:$4 sm:$0xff]   ;;  %v4561_v0 = vld [vmem:[#allocation11 + $0x20] ss:$16 sps:$4 sm:$0xff]  }
 0x2fc   :  { %v1610_v3 = vmax.f32 %v4165_v63, 0.0  ;;  %v4563_v63 = vld [vmem:[#allocation11 + $0x24] ss:$16 sps:$4 sm:$0xff]   ;;  %2575 = vmatprep.subr.bf16.mxu0 %v4557_v61  ;;  %v4567_v2 = vld [vmem:[#allocation11 + $0x40] ss:$16 sps:$4 sm:$0xff]  }
 0x2fd   :  { %v1611_v6 = vpack.c.bf16 %v1609_v1, %v1609_v1  ;;  %2576 = vmatpush1.bf16.msra.mxu0 %v4555_v60  ;;  %v4569_v1 = vld [vmem:[#allocation11 + $0x44] ss:$16 sps:$4 sm:$0xff]   ;;  %v4632_v60 = vld [vmem:[#allocation11 + $0x18c] ss:$16 sps:$4 sm:$0xff]   ;;  %v4630_v61 = vld [vmem:[#allocation11 + $0x188] ss:$16 sps:$4 sm:$0xff]  }
 0x2fe   :  { %v1612_v4 = vpack.c.bf16 %v1610_v3, %v1610_v3  ;;  %2577 = vmatprep.subr.bf16.mxu0 %v4563_v63  ;;  %v4575_v3 = vld [vmem:[#allocation11 + $0x64] ss:$16 sps:$4 sm:$0xff]   ;;  %v4636_v63 = vld [vmem:[#allocation11 + $0x1a8] ss:$16 sps:$4 sm:$0xff]  }
 0x300   :  { %1780 = vmatprep.mubr.bf16.mxu1 %v1612_v4  ;;  %v4573_v4 = vld [vmem:[#allocation11 + $0x60] ss:$16 sps:$4 sm:$0xff]  }
 0x301   :  { %1781 = vmatmul.mubr.bf16.vlgmr.msra.gmra.mrb[4].mxu1 %v1611_v6  ;;  %2578 = vmatpush1.bf16.msra.mxu0 %v4561_v0  ;;  %v4579_v6 = vld [vmem:[#allocation11 + $0x80] ss:$16 sps:$4 sm:$0xff]   ;;  %v4641_v0 = vld [vmem:[#allocation11 + $0x1c4] ss:$16 sps:$4 sm:$0xff]  }
 0x302   :  { %4121 = vmatpush3.bf16.msra.mxu1 %v4515_v5  ;;  %4136 = vmatprep.mubr.msk.bf16.mxu1 %vm5043_vm0, %v5042_v54  ;;  %v4581_v5 = vld [vmem:[#allocation11 + $0x84] ss:$16 sps:$4 sm:$0xff]  }
 0x303   :  { %4122 = vmatprep.subr.bf16.mxu1 %v5042_v54  ;;  %2579 = vmatprep.subr.bf16.mxu0 %v4569_v1  ;;  %v4644_v1 = vld [vmem:[#allocation11 + $0x1cc] ss:$16 sps:$4 sm:$0xff]  }
 0x305   :  { %2580 = vmatpush1.bf16.msra.mxu0 %v4567_v2  ;;  %v4639_v2 = vld [vmem:[#allocation11 + $0x1c0] ss:$16 sps:$4 sm:$0xff]  }
 0x306   :  { %4123 = vmatpush3.bf16.msra.mxu1 %v4516_v7  ;;  %2581 = vmatprep.subr.bf16.mxu0 %v4575_v3  ;;  %v4587_v7 = vld [vmem:[#allocation11 + $0xa4] ss:$16 sps:$4 sm:$0xff]   ;;  %v4642_v3 = vld [vmem:[#allocation11 + $0x1c8] ss:$16 sps:$4 sm:$0xff]  }
 0x307   :  { %4124 = vmatprep.subr.bf16.mxu1 %v5042_v54 }
 0x309   :  { %2582 = vmatpush1.bf16.msra.mxu0 %v4573_v4  ;;  %v4647_v4 = vld [vmem:[#allocation11 + $0x1e4] ss:$16 sps:$4 sm:$0xff]  }
 0x30a   :  { %4125 = vmatpush3.bf16.msra.mxu1 %v4517_v8  ;;  %2583 = vmatprep.subr.bf16.mxu0 %v4581_v5  ;;  %v4585_v8 = vld [vmem:[#allocation11 + $0xa0] ss:$16 sps:$4 sm:$0xff]   ;;  %v4650_v5 = vld [vmem:[#allocation11 + $0x1ec] ss:$16 sps:$4 sm:$0xff]  }
 0x30b   :  { %4126 = vmatprep.subr.bf16.mxu1 %v5042_v54 }
 0x30d   :  { %2584 = vmatpush1.bf16.msra.mxu0 %v4579_v6  ;;  %v4645_v6 = vld [vmem:[#allocation11 + $0x1e0] ss:$16 sps:$4 sm:$0xff]  }
 0x30e   :  { %4127 = vmatpush3.bf16.msra.mxu1 %v4518_v9  ;;  %2585 = vmatprep.subr.bf16.mxu0 %v4587_v7  ;;  %v4593_v9 = vld [vmem:[#allocation11 + $0xc4] ss:$16 sps:$4 sm:$0xff]   ;;  %v4648_v7 = vld [vmem:[#allocation11 + $0x1e8] ss:$16 sps:$4 sm:$0xff]  }
 0x30f   :  { %4128 = vmatprep.subr.bf16.mxu1 %v5042_v54 }
 0x311   :  { %2586 = vmatpush1.bf16.msra.mxu0 %v4585_v8  ;;  %v4653_v8 = vld [vmem:[#allocation13 + $0x4] ss:$16 sps:$4 sm:$0xff]  }
 0x312   :  { %4129 = vmatpush3.bf16.msra.mxu1 %v4519_v10  ;;  %v4591_v10 = vld [vmem:[#allocation11 + $0xc0] ss:$16 sps:$4 sm:$0xff]   ;;  %2587 = vmatprep.subr.bf16.mxu0 %v4593_v9  ;;  %v4656_v9 = vld [vmem:[#allocation13 + $0xc] ss:$16 sps:$4 sm:$0xff]  }
 0x313   :  { %4130 = vmatprep.subr.bf16.mxu1 %v5042_v54 }
 0x315   :  { %2588 = vmatpush1.bf16.msra.mxu0 %v4591_v10  ;;  %v2032_v10 = vld [vmem:[%s5405_s12] sm:$0x3] }
 0x316   :  { %4131 = vmatpush3.bf16.msra.mxu1 %v4520_v11  ;;  %v4599_v11 = vld [vmem:[#allocation11 + $0xe4] ss:$16 sps:$4 sm:$0xff]  }
 0x317   :  { %4132 = vmatprep.subr.bf16.mxu1 %v5042_v54  ;;  %2589 = vmatprep.subr.bf16.mxu0 %v4599_v11  ;;  %v2037_v11 = vrot.slane %v2032_v10, %v5270_v53 }
 0x31a   :  { %4133 = vmatpush3.bf16.msra.mxu1 %v4521_v12  ;;  %v4597_v12 = vld [vmem:[#allocation11 + $0xe0] ss:$16 sps:$4 sm:$0xff]  }
 0x31b   :  { %4134 = vmatprep.subr.bf16.mxu1 %v5042_v54  ;;  %2590 = vmatpush1.bf16.msra.mxu0 %v4597_v12  ;;  %v2041_v12 = vrot.slane %v2032_v10, %v5278_v55  ;;  %v4728_v10 = vld [vmem:[#allocation13 + $0x18c] ss:$16 sps:$4 sm:$0xff]  }
 0x31e   :  { %4135 = vmatpush3.bf16.msra.mxu1 %v4522_v13  ;;  %v4605_v13 = vld [vmem:[#allocation11 + $0x104] ss:$16 sps:$4 sm:$0xff]  }
 0x31f   :  { %4140 = vmatprep.subr.bf16.mxu1 %v5042_v54  ;;  %2591 = vmatprep.subr.bf16.mxu0 %v4605_v13 }
 0x3d4   :  { %v4096_v14 = vpop.f32.mrb[4].mxu1 }
 0x3d5   :  { %v4097_v16 = vpop.f32.mrb[5].mxu1 }
 0x3d6   :  { %v4098_v17 = vadd.f32 %v4097_v16, %v4096_v14  ;;  %v4099_v18 = vpop.f32.mrb[6].mxu1  ;;  %v4603_v14 = vld [vmem:[#allocation11 + $0x100] ss:$16 sps:$4 sm:$0xff]  }
 0x3d7   :  { %v4100_v19 = vpop.f32.mrb[7].mxu1  ;;  %2592 = vmatpush1.bf16.msra.mxu0 %v4603_v14  ;;  %v4609_v16 = vld [vmem:[#allocation11 + $0x120] ss:$16 sps:$4 sm:$0xff]  }
 0x3d8   :  { %v1783_v20 = vadd.f32 %v4098_v17, %v3837_v15  ;;  %v4611_v15 = vld [vmem:[#allocation11 + $0x124] ss:$16 sps:$4 sm:$0xff]   ;;  %v4615_v18 = vld [vmem:[#allocation11 + $0x140] ss:$16 sps:$4 sm:$0xff]  }
 0x3d9   :  { %2593 = vmatprep.subr.bf16.mxu0 %v4611_v15  ;;  %v4617_v17 = vld [vmem:[#allocation11 + $0x144] ss:$16 sps:$4 sm:$0xff]  }
 0x3da   :  { %v1788_v21 = vmax.f32 %v1783_v20, 0.0  ;;  %v4623_v19 = vld [vmem:[#allocation11 + $0x164] ss:$16 sps:$4 sm:$0xff]   ;;  %v4621_v20 = vld [vmem:[#allocation11 + $0x160] ss:$16 sps:$4 sm:$0xff]  }
 0x3db   :  { %2594 = vmatpush1.bf16.msra.mxu0 %v4609_v16 }
 0x3dc   :  { %v1789_v23 = vpack.c.bf16 %v1788_v21, %v1788_v21  ;;  %2595 = vmatprep.subr.bf16.mxu0 %v4617_v17  ;;  %v4629_v21 = vld [vmem:[#allocation11 + $0x184] ss:$16 sps:$4 sm:$0xff]  }
 0x3de   :  { %4137 = vmatmul.mubr.bf16.vlgmr.msra.gmra.mrb[8].mxu1 %v1789_v23  ;;  %v4635_v23 = vld [vmem:[#allocation11 + $0x1a4] ss:$16 sps:$4 sm:$0xff]  }
 0x3df   :  { %4141 = vmatpush3.bf16.msra.mxu1 %v4523_v22  ;;  %4156 = vmatprep.mubr.msk.bf16.mxu1 %vm5043_vm0, %v5042_v54  ;;  %v4627_v22 = vld [vmem:[#allocation11 + $0x180] ss:$16 sps:$4 sm:$0xff]  }
 0x3e0   :  { %4142 = vmatprep.subr.bf16.mxu1 %v5042_v54  ;;  %2596 = vmatpush1.bf16.msra.mxu0 %v4615_v18 }
 0x3e1   :  { %2597 = vmatprep.subr.bf16.mxu0 %v4623_v19 }
 0x3e3   :  { %4143 = vmatpush3.bf16.msra.mxu1 %v4524_v24  ;;  %v4633_v24 = vld [vmem:[#allocation11 + $0x1a0] ss:$16 sps:$4 sm:$0xff]  }
 0x3e4   :  { %4144 = vmatprep.subr.bf16.mxu1 %v5042_v54  ;;  %2598 = vmatpush1.bf16.msra.mxu0 %v4621_v20 }
 0x3e5   :  { %2599 = vmatprep.subr.bf16.mxu0 %v4629_v21 }
 0x3e7   :  { %4145 = vmatpush3.bf16.msra.mxu1 %v4525_v25  ;;  %v3863_v25 = vld [vmem:[%s5403_s10] ss:$0 sm:$0xff] }
 0x3e8   :  { %4146 = vmatprep.subr.bf16.mxu1 %v5042_v54  ;;  %2600 = vmatpush1.bf16.msra.mxu0 %v4627_v22  ;;  %v4651_v22 = vld [vmem:[#allocation13] ss:$16 sps:$4 sm:$0xff]  }
 0x3e9   :  { %2601 = vmatprep.subr.bf16.mxu0 %v4635_v23  ;;  %v4654_v23 = vld [vmem:[#allocation13 + $0x8] ss:$16 sps:$4 sm:$0xff]  }
 0x3eb   :  { %4147 = vmatpush3.bf16.msra.mxu1 %v4526_v26 }
 0x3ec   :  { %4148 = vmatprep.subr.bf16.mxu1 %v5042_v54  ;;  %2602 = vmatpush1.bf16.msra.mxu0 %v4633_v24 }
 0x3ed   :  { %2603 = vmatprep.subr.bf16.mxu0 %v4641_v0  ;;  %v4708_v0 = vld [vmem:[#allocation13 + $0x128] ss:$16 sps:$4 sm:$0xff]  }
 0x3ef   :  { %4149 = vmatpush3.bf16.msra.mxu1 %v4527_v27 }
 0x3f0   :  { %4150 = vmatprep.subr.bf16.mxu1 %v5042_v54  ;;  %2604 = vmatpush1.bf16.msra.mxu0 %v4639_v2  ;;  %v4716_v2 = vld [vmem:[#allocation13 + $0x14c] ss:$16 sps:$4 sm:$0xff]  }
 0x3f1   :  { %2605 = vmatprep.subr.bf16.mxu0 %v4647_v4  ;;  %v4714_v4 = vld [vmem:[#allocation13 + $0x148] ss:$16 sps:$4 sm:$0xff]  }
 0x3f3   :  { %4151 = vmatpush3.bf16.msra.mxu1 %v4528_v28 }
 0x3f4   :  { %4152 = vmatprep.subr.bf16.mxu1 %v5042_v54  ;;  %2606 = vmatpush1.bf16.msra.mxu0 %v4645_v6  ;;  %v4722_v6 = vld [vmem:[#allocation13 + $0x16c] ss:$16 sps:$4 sm:$0xff]  }
 0x3f5   :  { %3455 = vmatprep.subr.bf16.mxu0 %v4653_v8  ;;  %v4720_v8 = vld [vmem:[#allocation13 + $0x168] ss:$16 sps:$4 sm:$0xff]  }
 0x3f7   :  { %4153 = vmatpush3.bf16.msra.mxu1 %v4529_v29 }
 0x3f8   :  { %4154 = vmatprep.subr.bf16.mxu1 %v5042_v54  ;;  %v4549_v54 = vld [vmem:[#allocation10 + $0x60] ss:$8 sps:$4 sm:$0xff]  }
 0x3fb   :  { %4155 = vmatpush3.bf16.msra.mxu1 %v4530_v30 }
 0x3fc   :  { %2124 = vmatprep.subr.bf16.mxu1 %v4533_v31 }
 0x4b1   :  { %v1895_v33 = vpop.f32.mrb[8].mxu1 }
 0x4b2   :  { %v1896_v34 = vadd.f32 %v3854_v32, %v1895_v33  ;;  %v4138_v35 = vpop.f32.mrb[9].mxu1  ;;  %v4558_v32 = vld [vmem:[#allocation11 + $0x8] ss:$16 sps:$4 sm:$0xff]  }
 0x4b3   :  { %v1898_v36 = vpop.f32.mrb[10].mxu1  ;;  %v4564_v35 = vld [vmem:[#allocation11 + $0x28] ss:$16 sps:$4 sm:$0xff]  }
 0x4b4   :  { %v1901_v37 = vmax.f32 %v1896_v34, 0.0  ;;  %v4139_v39 = vpop.f32.mrb[11].mxu1  ;;  %v4566_v34 = vld [vmem:[#allocation11 + $0x2c] ss:$16 sps:$4 sm:$0xff]  }
 0x4b5   :  { %v4572_v36 = vld [vmem:[#allocation11 + $0x4c] ss:$16 sps:$4 sm:$0xff]  }
 0x4b6   :  { %v1902_v41 = vpack.c.bf16 %v1901_v37, %v1901_v37  ;;  %v4570_v37 = vld [vmem:[#allocation11 + $0x48] ss:$16 sps:$4 sm:$0xff]   ;;  %v4578_v39 = vld [vmem:[#allocation11 + $0x6c] ss:$16 sps:$4 sm:$0xff]  }
 0x4b8   :  { %4157 = vmatmul.mubr.bf16.vlgmr.msra.gmra.mrb[12].mxu1 %v1902_v41  ;;  %v4584_v41 = vld [vmem:[#allocation11 + $0x8c] ss:$16 sps:$4 sm:$0xff]  }
 0x4b9   :  { %2125 = vmatpush1.bf16.msra.mxu1 %v4531_v40  ;;  %2156 = vmatprep.mubr.bf16.mxu1 %v5044_v59  ;;  %v4576_v40 = vld [vmem:[#allocation11 + $0x68] ss:$16 sps:$4 sm:$0xff]  }
 0x4ba   :  { %2126 = vmatprep.subr.bf16.mxu1 %v4536_v42  ;;  %v4582_v42 = vld [vmem:[#allocation11 + $0x88] ss:$16 sps:$4 sm:$0xff]  }
 0x4bb   :  { %v4624_v59 = vld [vmem:[#allocation11 + $0x168] ss:$16 sps:$4 sm:$0xff]  }
 0x4bd   :  { %2127 = vmatpush1.bf16.msra.mxu1 %v4534_v43  ;;  %v4590_v43 = vld [vmem:[#allocation11 + $0xac] ss:$16 sps:$4 sm:$0xff]  }
 0x4be   :  { %2128 = vmatprep.subr.bf16.mxu1 %v4539_v44  ;;  %v4588_v44 = vld [vmem:[#allocation11 + $0xa8] ss:$16 sps:$4 sm:$0xff]  }
 0x4c1   :  { %2129 = vmatpush1.bf16.msra.mxu1 %v4537_v45  ;;  %v4596_v45 = vld [vmem:[#allocation11 + $0xcc] ss:$16 sps:$4 sm:$0xff]  }
 0x4c2   :  { %2130 = vmatprep.subr.bf16.mxu1 %v4542_v46  ;;  %v4594_v46 = vld [vmem:[#allocation11 + $0xc8] ss:$16 sps:$4 sm:$0xff]  }
 0x4c5   :  { %2131 = vmatpush1.bf16.msra.mxu1 %v4540_v47  ;;  %v4602_v47 = vld [vmem:[#allocation11 + $0xec] ss:$16 sps:$4 sm:$0xff]  }
 0x4c6   :  { %2132 = vmatprep.subr.bf16.mxu1 %v4545_v48  ;;  %v4600_v48 = vld [vmem:[#allocation11 + $0xe8] ss:$16 sps:$4 sm:$0xff]  }
 0x4c9   :  { %2133 = vmatpush1.bf16.msra.mxu1 %v4543_v49  ;;  %v4608_v49 = vld [vmem:[#allocation11 + $0x10c] ss:$16 sps:$4 sm:$0xff]  }
 0x4ca   :  { %2134 = vmatprep.subr.bf16.mxu1 %v4548_v50  ;;  %v4606_v50 = vld [vmem:[#allocation11 + $0x108] ss:$16 sps:$4 sm:$0xff]  }
 0x4cd   :  { %2135 = vmatpush1.bf16.msra.mxu1 %v4546_v51  ;;  %v4614_v51 = vld [vmem:[#allocation11 + $0x12c] ss:$16 sps:$4 sm:$0xff]  }
 0x4ce   :  { %2136 = vmatprep.subr.bf16.mxu1 %v4551_v52  ;;  %v4612_v52 = vld [vmem:[#allocation11 + $0x128] ss:$16 sps:$4 sm:$0xff]  }
 0x4d1   :  { %2137 = vmatpush1.bf16.msra.mxu1 %v4549_v54  ;;  %v4620_v54 = vld [vmem:[#allocation11 + $0x14c] ss:$16 sps:$4 sm:$0xff]  }
 0x4d2   :  { %2138 = vmatprep.subr.bf16.mxu1 %v4554_v57  ;;  %v4618_v57 = vld [vmem:[#allocation11 + $0x148] ss:$16 sps:$4 sm:$0xff]  }
 0x4d5   :  { %2139 = vmatpush1.bf16.msra.mxu1 %v4552_v58  ;;  %v4626_v58 = vld [vmem:[#allocation11 + $0x16c] ss:$16 sps:$4 sm:$0xff]  }
 0x4d6   :  { %2616 = vmatprep.subr.bf16.mxu1 %v4560_v62  ;;  %v4638_v62 = vld [vmem:[#allocation11 + $0x1ac] ss:$16 sps:$4 sm:$0xff]  }
 0x58b   :  { %v2008_v26 = vpop.f32.mrb[12].mxu1 }
 0x58c   :  { %v2009_v27 = vadd.f32 %v3863_v25, %v2008_v26  ;;  %v4158_v28 = vpop.f32.mrb[13].mxu1  ;;  %v4659_v25 = vld [vmem:[#allocation13 + $0x24] ss:$16 sps:$4 sm:$0xff]   ;;  %v4662_v26 = vld [vmem:[#allocation13 + $0x2c] ss:$16 sps:$4 sm:$0xff]  }
 0x58d   :  { %v2011_v29 = vpop.f32.mrb[14].mxu1  ;;  %v4660_v28 = vld [vmem:[#allocation13 + $0x28] ss:$16 sps:$4 sm:$0xff]  }
 0x58e   :  { %v2014_v30 = vmax.f32 %v2009_v27, 0.0  ;;  %v4159_v31 = vpop.f32.mrb[15].mxu1  ;;  %v4657_v27 = vld [vmem:[#allocation13 + $0x20] ss:$16 sps:$4 sm:$0xff]   ;;  %v4665_v29 = vld [vmem:[#allocation13 + $0x44] ss:$16 sps:$4 sm:$0xff]  }
 0x58f   :  { %v4663_v31 = vld [vmem:[#allocation13 + $0x40] ss:$16 sps:$4 sm:$0xff]  }
 0x590   :  { %v2015_v33 = vpack.c.bf16 %v2014_v30, %v2014_v30  ;;  %v4668_v30 = vld [vmem:[#allocation13 + $0x4c] ss:$16 sps:$4 sm:$0xff]  }
 0x592   :  { %2157 = vmatmul.mubr.bf16.vlgmr.msra.gmra.mrb[16].mxu1 %v2015_v33  ;;  %v4671_v33 = vld [vmem:[#allocation13 + $0x64] ss:$16 sps:$4 sm:$0xff]  }
 0x593   :  { %2617 = vmatpush1.bf16.msra.mxu1 %v4558_v32  ;;  %v4666_v32 = vld [vmem:[#allocation13 + $0x48] ss:$16 sps:$4 sm:$0xff]  }
 0x594   :  { %2618 = vmatprep.subr.bf16.mxu1 %v4566_v34  ;;  %v4674_v34 = vld [vmem:[#allocation13 + $0x6c] ss:$16 sps:$4 sm:$0xff]  }
 0x597   :  { %2619 = vmatpush1.bf16.msra.mxu1 %v4564_v35  ;;  %v4669_v35 = vld [vmem:[#allocation13 + $0x60] ss:$16 sps:$4 sm:$0xff]  }
 0x598   :  { %2620 = vmatprep.subr.bf16.mxu1 %v4572_v36  ;;  %v4672_v36 = vld [vmem:[#allocation13 + $0x68] ss:$16 sps:$4 sm:$0xff]  }
 0x59b   :  { %2621 = vmatpush1.bf16.msra.mxu1 %v4570_v37  ;;  %v4677_v37 = vld [vmem:[#allocation13 + $0x84] ss:$16 sps:$4 sm:$0xff]  }
 0x59c   :  { %2622 = vmatprep.subr.bf16.mxu1 %v4578_v39  ;;  %v4680_v39 = vld [vmem:[#allocation13 + $0x8c] ss:$16 sps:$4 sm:$0xff]  }
 0x59f   :  { %2623 = vmatpush1.bf16.msra.mxu1 %v4576_v40  ;;  %v4675_v40 = vld [vmem:[#allocation13 + $0x80] ss:$16 sps:$4 sm:$0xff]  }
 0x5a0   :  { %2624 = vmatprep.subr.bf16.mxu1 %v4584_v41  ;;  %v4678_v41 = vld [vmem:[#allocation13 + $0x88] ss:$16 sps:$4 sm:$0xff]  }
 0x5a3   :  { %2625 = vmatpush1.bf16.msra.mxu1 %v4582_v42  ;;  %v4683_v42 = vld [vmem:[#allocation13 + $0xa4] ss:$16 sps:$4 sm:$0xff]  }
 0x5a4   :  { %2626 = vmatprep.subr.bf16.mxu1 %v4590_v43  ;;  %v4686_v43 = vld [vmem:[#allocation13 + $0xac] ss:$16 sps:$4 sm:$0xff]  }
 0x5a7   :  { %2627 = vmatpush1.bf16.msra.mxu1 %v4588_v44  ;;  %v4681_v44 = vld [vmem:[#allocation13 + $0xa0] ss:$16 sps:$4 sm:$0xff]  }
 0x5a8   :  { %2628 = vmatprep.subr.bf16.mxu1 %v4596_v45  ;;  %v4684_v45 = vld [vmem:[#allocation13 + $0xa8] ss:$16 sps:$4 sm:$0xff]  }
 0x5ab   :  { %2629 = vmatpush1.bf16.msra.mxu1 %v4594_v46  ;;  %v4689_v46 = vld [vmem:[#allocation13 + $0xc4] ss:$16 sps:$4 sm:$0xff]  }
 0x5ac   :  { %2630 = vmatprep.subr.bf16.mxu1 %v4602_v47  ;;  %v4692_v47 = vld [vmem:[#allocation13 + $0xcc] ss:$16 sps:$4 sm:$0xff]  }
 0x5af   :  { %2631 = vmatpush1.bf16.msra.mxu1 %v4600_v48  ;;  %v4687_v48 = vld [vmem:[#allocation13 + $0xc0] ss:$16 sps:$4 sm:$0xff]  }
 0x5b0   :  { %2632 = vmatprep.subr.bf16.mxu1 %v4608_v49  ;;  %v4690_v49 = vld [vmem:[#allocation13 + $0xc8] ss:$16 sps:$4 sm:$0xff]  }
 0x5b3   :  { %2633 = vmatpush1.bf16.msra.mxu1 %v4606_v50  ;;  %v4695_v50 = vld [vmem:[#allocation13 + $0xe4] ss:$16 sps:$4 sm:$0xff]  }
 0x5b4   :  { %2634 = vmatprep.subr.bf16.mxu1 %v4614_v51  ;;  %v4698_v51 = vld [vmem:[#allocation13 + $0xec] ss:$16 sps:$4 sm:$0xff]  }
 0x5b7   :  { %2635 = vmatpush1.bf16.msra.mxu1 %v4612_v52  ;;  %v4693_v52 = vld [vmem:[#allocation13 + $0xe0] ss:$16 sps:$4 sm:$0xff]  }
 0x5b8   :  { %2636 = vmatprep.subr.bf16.mxu1 %v4620_v54  ;;  %v4696_v54 = vld [vmem:[#allocation13 + $0xe8] ss:$16 sps:$4 sm:$0xff]  }
 0x5bb   :  { %2637 = vmatpush1.bf16.msra.mxu1 %v4618_v57  ;;  %v4701_v57 = vld [vmem:[#allocation13 + $0x104] ss:$16 sps:$4 sm:$0xff]  }
 0x5bc   :  { %2638 = vmatprep.subr.bf16.mxu1 %v4626_v58  ;;  %v4704_v58 = vld [vmem:[#allocation13 + $0x10c] ss:$16 sps:$4 sm:$0xff]  }
 0x5bf   :  { %2639 = vmatpush1.bf16.msra.mxu1 %v4624_v59  ;;  %v4699_v59 = vld [vmem:[#allocation13 + $0x100] ss:$16 sps:$4 sm:$0xff]  }
 0x5c0   :  { %2640 = vmatprep.subr.bf16.mxu1 %v4632_v60  ;;  %v4702_v60 = vld [vmem:[#allocation13 + $0x108] ss:$16 sps:$4 sm:$0xff]  }
 0x5c3   :  { %2641 = vmatpush1.bf16.msra.mxu1 %v4630_v61  ;;  %v4707_v61 = vld [vmem:[#allocation13 + $0x124] ss:$16 sps:$4 sm:$0xff]  }
 0x5c4   :  { %2642 = vmatprep.subr.bf16.mxu1 %v4638_v62  ;;  %v4710_v62 = vld [vmem:[#allocation13 + $0x12c] ss:$16 sps:$4 sm:$0xff]  }
 0x5c7   :  { %2643 = vmatpush1.bf16.msra.mxu1 %v4636_v63  ;;  %v4705_v63 = vld [vmem:[#allocation13 + $0x120] ss:$16 sps:$4 sm:$0xff]  }
 0x5c8   :  { %2644 = vmatprep.subr.bf16.mxu1 %v4644_v1  ;;  %v4713_v1 = vld [vmem:[#allocation13 + $0x144] ss:$16 sps:$4 sm:$0xff]  }
 0x5cb   :  { %2645 = vmatpush1.bf16.msra.mxu1 %v4642_v3  ;;  %v4711_v3 = vld [vmem:[#allocation13 + $0x140] ss:$16 sps:$4 sm:$0xff]  }
 0x5cc   :  { %2646 = vmatprep.subr.bf16.mxu1 %v4650_v5  ;;  %v4719_v5 = vld [vmem:[#allocation13 + $0x164] ss:$16 sps:$4 sm:$0xff]  }
 0x5cf   :  { %2647 = vmatpush1.bf16.msra.mxu1 %v4648_v7  ;;  %v4717_v7 = vld [vmem:[#allocation13 + $0x160] ss:$16 sps:$4 sm:$0xff]  }
 0x5d0   :  { %3537 = vmatprep.subr.bf16.mxu1 %v4656_v9  ;;  %v4725_v9 = vld [vmem:[#allocation13 + $0x184] ss:$16 sps:$4 sm:$0xff]  }
 0x665   :  { %v2158_v13 = vpop.f32.mrb[16].mxu1 }
 0x666   :  { %v2159_v14 = vadd.f32 %v2158_v13, %v2037_v11  ;;  %v2160_v15 = vpop.f32.mrb[17].mxu1  ;;  %v4723_v11 = vld [vmem:[#allocation13 + $0x180] ss:$16 sps:$4 sm:$0xff]   ;;  %v4731_v13 = vld [vmem:[#allocation13 + $0x1a4] ss:$16 sps:$4 sm:$0xff]  }
 0x667   :  { %v2161_v16 = vadd.f32 %v2160_v15, %v2041_v12  ;;  %v2162_v17 = vpop.f32.mrb[18].mxu1  ;;  %v4726_v12 = vld [vmem:[#allocation13 + $0x188] ss:$16 sps:$4 sm:$0xff]   ;;  %v4729_v15 = vld [vmem:[#allocation13 + $0x1a0] ss:$16 sps:$4 sm:$0xff]  }
 0x668   :  { %v2165_v18 = vmax.f32 %v2159_v14, 0.0  ;;  %v2163_v19 = vpop.f32.mrb[19].mxu1  ;;  %v4734_v14 = vld [vmem:[#allocation13 + $0x1ac] ss:$16 sps:$4 sm:$0xff]   ;;  %v4737_v17 = vld [vmem:[#allocation13 + $0x1c4] ss:$16 sps:$4 sm:$0xff]  }
 0x669   :  { %v2166_v20 = vmax.f32 %v2161_v16, 0.0  ;;  %v4732_v16 = vld [vmem:[#allocation13 + $0x1a8] ss:$16 sps:$4 sm:$0xff]   ;;  %v4735_v19 = vld [vmem:[#allocation13 + $0x1c0] ss:$16 sps:$4 sm:$0xff]  }
 0x66a   :  { %v2167_v24 = vpack.c.bf16 %v2165_v18, %v2165_v18  ;;  %v4740_v18 = vld [vmem:[#allocation13 + $0x1cc] ss:$16 sps:$4 sm:$0xff]  }
 0x66b   :  { %v2168_v21 = vpack.c.bf16 %v2166_v20, %v2166_v20  ;;  %v4738_v20 = vld [vmem:[#allocation13 + $0x1c8] ss:$16 sps:$4 sm:$0xff]  }
 0x66d   :  { %2607 = vmatprep.mubr.bf16.mxu0 %v2168_v21  ;;  %2648 = vmatprep.mubr.bf16.mxu1 %v2168_v21  ;;  %v4743_v21 = vld [vmem:[#allocation13 + $0x1e4] ss:$16 sps:$4 sm:$0xff]  }
 0x66e   :  { %2608 = vmatmul.mubr.bf16.vlgmr.msra.gmra.mrb[8].mxu0 %v2167_v24  ;;  %2649 = vmatmul.mubr.bf16.vlgmr.msra.gmra.mrb[20].mxu1 %v2167_v24  ;;  %v4744_v24 = vld [vmem:[#allocation13 + $0x1e8] ss:$16 sps:$4 sm:$0xff]  }
 0x66f   :  { %3456 = vmatpush1.bf16.msra.mxu0 %v4651_v22  ;;  %3538 = vmatpush1.bf16.msra.mxu1 %v4654_v23  ;;  %v4746_v22 = vld [vmem:[#allocation13 + $0x1ec] ss:$16 sps:$4 sm:$0xff]   ;;  %v4741_v23 = vld [vmem:[#allocation13 + $0x1e0] ss:$16 sps:$4 sm:$0xff]  }
 0x670   :  { %3457 = vmatprep.subr.bf16.mxu0 %v4659_v25  ;;  %3539 = vmatprep.subr.bf16.mxu1 %v4662_v26  ;;  %v4749_v25 = vld [vmem:[#allocation13 + $0x204] ss:$16 sps:$4 sm:$0xff]   ;;  %v4752_v26 = vld [vmem:[#allocation13 + $0x20c] ss:$16 sps:$4 sm:$0xff]  }
 0x673   :  { %3458 = vmatpush1.bf16.msra.mxu0 %v4657_v27  ;;  %3540 = vmatpush1.bf16.msra.mxu1 %v4660_v28  ;;  %v5361_v27 = vld [vmem:[%s5407_s14] sm:$0xf] }
 0x674   :  { %3459 = vmatprep.subr.bf16.mxu0 %v4665_v29  ;;  %3541 = vmatprep.subr.bf16.mxu1 %v4668_v30  ;;  %v2238_v28 = vrot.slane %v5361_v27, %v5270_v53  ;;  %v2242_v29 = vrot.slane %v5361_v27, %v5278_v55  ;;  %v2250_v30 = vrot.slane %v5361_v27, %v5281_v56 }
 0x677   :  { %3460 = vmatpush1.bf16.msra.mxu0 %v4663_v31  ;;  %3542 = vmatpush1.bf16.msra.mxu1 %v4666_v32 }
 0x678   :  { %3461 = vmatprep.subr.bf16.mxu0 %v4671_v33  ;;  %3543 = vmatprep.subr.bf16.mxu1 %v4674_v34 }
 0x67b   :  { %3462 = vmatpush1.bf16.msra.mxu0 %v4669_v35  ;;  %3544 = vmatpush1.bf16.msra.mxu1 %v4672_v36 }
 0x67c   :  { %3463 = vmatprep.subr.bf16.mxu0 %v4677_v37  ;;  %3545 = vmatprep.subr.bf16.mxu1 %v4680_v39 }
 0x67f   :  { %3464 = vmatpush1.bf16.msra.mxu0 %v4675_v40  ;;  %3546 = vmatpush1.bf16.msra.mxu1 %v4678_v41 }
 0x680   :  { %3465 = vmatprep.subr.bf16.mxu0 %v4683_v42  ;;  %3547 = vmatprep.subr.bf16.mxu1 %v4686_v43 }
 0x683   :  { %3466 = vmatpush1.bf16.msra.mxu0 %v4681_v44  ;;  %3548 = vmatpush1.bf16.msra.mxu1 %v4684_v45 }
 0x684   :  { %3467 = vmatprep.subr.bf16.mxu0 %v4689_v46  ;;  %3549 = vmatprep.subr.bf16.mxu1 %v4692_v47  ;;  %v4747_v47 = vld [vmem:[#allocation13 + $0x200] ss:$16 sps:$4 sm:$0xff]  }
 0x687   :  { %3468 = vmatpush1.bf16.msra.mxu0 %v4687_v48  ;;  %3550 = vmatpush1.bf16.msra.mxu1 %v4690_v49  ;;  %v4750_v48 = vld [vmem:[#allocation13 + $0x208] ss:$16 sps:$4 sm:$0xff]  }
 0x688   :  { %3469 = vmatprep.subr.bf16.mxu0 %v4695_v50  ;;  %3551 = vmatprep.subr.bf16.mxu1 %v4698_v51  ;;  %v4755_v50 = vld [vmem:[#allocation13 + $0x224] ss:$16 sps:$4 sm:$0xff]   ;;  %v4758_v51 = vld [vmem:[#allocation13 + $0x22c] ss:$16 sps:$4 sm:$0xff]  }
 0x68b   :  { %3470 = vmatpush1.bf16.msra.mxu0 %v4693_v52  ;;  %3552 = vmatpush1.bf16.msra.mxu1 %v4696_v54  ;;  %v4753_v54 = vld [vmem:[#allocation13 + $0x220] ss:$16 sps:$4 sm:$0xff]  }
 0x68c   :  { %3471 = vmatprep.subr.bf16.mxu0 %v4701_v57  ;;  %3553 = vmatprep.subr.bf16.mxu1 %v4704_v58  ;;  %v4756_v57 = vld [vmem:[#allocation13 + $0x228] ss:$16 sps:$4 sm:$0xff]   ;;  %v4761_v58 = vld [vmem:[#allocation13 + $0x244] ss:$16 sps:$4 sm:$0xff]  }
 0x68f   :  { %3472 = vmatpush1.bf16.msra.mxu0 %v4699_v59  ;;  %3554 = vmatpush1.bf16.msra.mxu1 %v4702_v60  ;;  %v4764_v59 = vld [vmem:[#allocation13 + $0x24c] ss:$16 sps:$4 sm:$0xff]   ;;  %v4759_v60 = vld [vmem:[#allocation13 + $0x240] ss:$16 sps:$4 sm:$0xff]  }
 0x690   :  { %3473 = vmatprep.subr.bf16.mxu0 %v4707_v61  ;;  %3555 = vmatprep.subr.bf16.mxu1 %v4710_v62  ;;  %v4762_v61 = vld [vmem:[#allocation13 + $0x248] ss:$16 sps:$4 sm:$0xff]   ;;  %v4767_v62 = vld [vmem:[#allocation13 + $0x264] ss:$16 sps:$4 sm:$0xff]  }
 0x693   :  { %3474 = vmatpush1.bf16.msra.mxu0 %v4705_v63  ;;  %3556 = vmatpush1.bf16.msra.mxu1 %v4708_v0  ;;  %v4770_v63 = vld [vmem:[#allocation13 + $0x26c] ss:$16 sps:$4 sm:$0xff]   ;;  %v4765_v0 = vld [vmem:[#allocation13 + $0x260] ss:$16 sps:$4 sm:$0xff]  }
 0x694   :  { %3475 = vmatprep.subr.bf16.mxu0 %v4713_v1  ;;  %3557 = vmatprep.subr.bf16.mxu1 %v4716_v2  ;;  %v4768_v1 = vld [vmem:[#allocation13 + $0x268] ss:$16 sps:$4 sm:$0xff]   ;;  %v4773_v2 = vld [vmem:[#allocation13 + $0x284] ss:$16 sps:$4 sm:$0xff]  }
 0x697   :  { %3476 = vmatpush1.bf16.msra.mxu0 %v4711_v3  ;;  %3558 = vmatpush1.bf16.msra.mxu1 %v4714_v4  ;;  %v4776_v3 = vld [vmem:[#allocation13 + $0x28c] ss:$16 sps:$4 sm:$0xff]   ;;  %v4771_v4 = vld [vmem:[#allocation13 + $0x280] ss:$16 sps:$4 sm:$0xff]  }
 0x698   :  { %3477 = vmatprep.subr.bf16.mxu0 %v4719_v5  ;;  %3559 = vmatprep.subr.bf16.mxu1 %v4722_v6  ;;  %v4774_v5 = vld [vmem:[#allocation13 + $0x288] ss:$16 sps:$4 sm:$0xff]   ;;  %v4779_v6 = vld [vmem:[#allocation13 + $0x2a4] ss:$16 sps:$4 sm:$0xff]  }
 0x69b   :  { %3478 = vmatpush1.bf16.msra.mxu0 %v4717_v7  ;;  %3560 = vmatpush1.bf16.msra.mxu1 %v4720_v8  ;;  %v4782_v7 = vld [vmem:[#allocation13 + $0x2ac] ss:$16 sps:$4 sm:$0xff]   ;;  %v4777_v8 = vld [vmem:[#allocation13 + $0x2a0] ss:$16 sps:$4 sm:$0xff]  }
 0x69c   :  { %3479 = vmatprep.subr.bf16.mxu0 %v4725_v9  ;;  %3561 = vmatprep.subr.bf16.mxu1 %v4728_v10  ;;  %v4780_v9 = vld [vmem:[#allocation13 + $0x2a8] ss:$16 sps:$4 sm:$0xff]   ;;  %v4785_v10 = vld [vmem:[#allocation13 + $0x2c4] ss:$16 sps:$4 sm:$0xff]  }
 0x69f   :  { %3480 = vmatpush1.bf16.msra.mxu0 %v4723_v11  ;;  %3562 = vmatpush1.bf16.msra.mxu1 %v4726_v12  ;;  %v4788_v11 = vld [vmem:[#allocation13 + $0x2cc] ss:$16 sps:$4 sm:$0xff]   ;;  %v4783_v12 = vld [vmem:[#allocation13 + $0x2c0] ss:$16 sps:$4 sm:$0xff]  }
 0x6a0   :  { %3481 = vmatprep.subr.bf16.mxu0 %v4731_v13  ;;  %3563 = vmatprep.subr.bf16.mxu1 %v4734_v14  ;;  %v4786_v13 = vld [vmem:[#allocation13 + $0x2c8] ss:$16 sps:$4 sm:$0xff]   ;;  %v4791_v14 = vld [vmem:[#allocation13 + $0x2e4] ss:$16 sps:$4 sm:$0xff]  }
 0x6a3   :  { %3482 = vmatpush1.bf16.msra.mxu0 %v4729_v15  ;;  %3564 = vmatpush1.bf16.msra.mxu1 %v4732_v16  ;;  %v4794_v15 = vld [vmem:[#allocation13 + $0x2ec] ss:$16 sps:$4 sm:$0xff]   ;;  %v4789_v16 = vld [vmem:[#allocation13 + $0x2e0] ss:$16 sps:$4 sm:$0xff]  }
 0x6a4   :  { %3483 = vmatprep.subr.bf16.mxu0 %v4737_v17  ;;  %3565 = vmatprep.subr.bf16.mxu1 %v4740_v18  ;;  %v4792_v17 = vld [vmem:[#allocation13 + $0x2e8] ss:$16 sps:$4 sm:$0xff]   ;;  %v4797_v18 = vld [vmem:[#allocation13 + $0x304] ss:$16 sps:$4 sm:$0xff]  }
 0x6a7   :  { %3484 = vmatpush1.bf16.msra.mxu0 %v4735_v19  ;;  %3566 = vmatpush1.bf16.msra.mxu1 %v4738_v20  ;;  %v4800_v19 = vld [vmem:[#allocation13 + $0x30c] ss:$16 sps:$4 sm:$0xff]   ;;  %v4795_v20 = vld [vmem:[#allocation13 + $0x300] ss:$16 sps:$4 sm:$0xff]  }
 0x6a8   :  { %3485 = vmatprep.subr.bf16.mxu0 %v4743_v21  ;;  %3567 = vmatprep.subr.bf16.mxu1 %v4746_v22  ;;  %v4798_v21 = vld [vmem:[#allocation13 + $0x308] ss:$16 sps:$4 sm:$0xff]   ;;  %v4803_v22 = vld [vmem:[#allocation13 + $0x324] ss:$16 sps:$4 sm:$0xff]  }
 0x6ab   :  { %3486 = vmatpush1.bf16.msra.mxu0 %v4741_v23  ;;  %3568 = vmatpush1.bf16.msra.mxu1 %v4744_v24  ;;  %v4806_v23 = vld [vmem:[#allocation13 + $0x32c] ss:$16 sps:$4 sm:$0xff]   ;;  %v4801_v24 = vld [vmem:[#allocation13 + $0x320] ss:$16 sps:$4 sm:$0xff]  }
 0x6ac   :  { %3496 = vmatprep.subr.bf16.mxu0 %v4749_v25  ;;  %3578 = vmatprep.subr.bf16.mxu1 %v4752_v26  ;;  %v4804_v25 = vld [vmem:[#allocation13 + $0x328] ss:$16 sps:$4 sm:$0xff]   ;;  %v4809_v26 = vld [vmem:[#allocation13 + $0x344] ss:$16 sps:$4 sm:$0xff]  }
 0x741   :  { %v2609_v31 = vpop.f32.mrb[8].mxu0  ;;  %v5369_v32 = vpop.f32.mrb[20].mxu1 }
 0x742   :  { %v2610_v33 = vadd.f32 %v2609_v31, %v2238_v28  ;;  %v2611_v34 = vpop.f32.mrb[9].mxu0  ;;  %v2652_v35 = vpop.f32.mrb[21].mxu1  ;;  %v4812_v28 = vld [vmem:[#allocation13 + $0x34c] ss:$16 sps:$4 sm:$0xff]   ;;  %v4815_v31 = vld [vmem:[#allocation13 + $0x364] ss:$16 sps:$4 sm:$0xff]  }
 0x743   :  { %v2612_v36 = vadd.f32 %v2611_v34, %v2242_v29  ;;  %v2653_v37 = vadd.f32 %v2652_v35, %v2250_v30  ;;  %v2613_v39 = vpop.f32.mrb[10].mxu0  ;;  %v2654_v40 = vpop.f32.mrb[22].mxu1  ;;  %v4807_v29 = vld [vmem:[#allocation13 + $0x340] ss:$16 sps:$4 sm:$0xff]   ;;  %v4810_v30 = vld [vmem:[#allocation13 + $0x348] ss:$16 sps:$4 sm:$0xff]  }
 0x744   :  { %v2657_v41 = vmax.f32 %v2610_v33, 0.0  ;;  %v2614_v42 = vpop.f32.mrb[11].mxu0  ;;  %v2655_v43 = vpop.f32.mrb[23].mxu1  ;;  %v4818_v33 = vld [vmem:[#allocation13 + $0x36c] ss:$16 sps:$4 sm:$0xff]  }
 0x745   :  { %v2658_v44 = vmax.f32 %v2612_v36, 0.0  ;;  %v2660_v45 = vmax.f32 %v2653_v37, 0.0  ;;  %v4813_v34 = vld [vmem:[#allocation13 + $0x360] ss:$16 sps:$4 sm:$0xff]   ;;  %v4816_v35 = vld [vmem:[#allocation13 + $0x368] ss:$16 sps:$4 sm:$0xff]  }
 0x746   :  { %v2661_v49 = vpack.c.bf16 %v2657_v41, %v2657_v41  ;;  %v4821_v36 = vld [vmem:[#allocation13 + $0x384] ss:$16 sps:$4 sm:$0xff]   ;;  %v4824_v37 = vld [vmem:[#allocation13 + $0x38c] ss:$16 sps:$4 sm:$0xff]   ;;  %v4819_v39 = vld [vmem:[#allocation13 + $0x380] ss:$16 sps:$4 sm:$0xff]  }
 0x747   :  { %v2662_v46 = vpack.c.bf16 %v2658_v44, %v2658_v44  ;;  %v2664_v52 = vpack.c.bf16 %v2660_v45, %v2660_v45  ;;  %v4822_v40 = vld [vmem:[#allocation13 + $0x388] ss:$16 sps:$4 sm:$0xff]   ;;  %v4827_v41 = vld [vmem:[#allocation13 + $0x3a4] ss:$16 sps:$4 sm:$0xff]   ;;  %v4830_v42 = vld [vmem:[#allocation13 + $0x3ac] ss:$16 sps:$4 sm:$0xff]   ;;  %v2246_v45 = vrot.slane %v5361_v27, %v5292_v38 }
 0x748   :  { %v4825_v43 = vld [vmem:[#allocation13 + $0x3a0] ss:$16 sps:$4 sm:$0xff]   ;;  %v4828_v44 = vld [vmem:[#allocation13 + $0x3a8] ss:$16 sps:$4 sm:$0xff]  }
 0x749   :  { %3487 = vmatprep.mubr.bf16.mxu0 %v2662_v46  ;;  %3569 = vmatprep.mubr.bf16.mxu1 %v2662_v46  ;;  %v4833_v46 = vld [vmem:[#allocation13 + $0x3c4] ss:$16 sps:$4 sm:$0xff]  }
 0x74a   :  { %3488 = vmatmul.mubr.bf16.vlgmr.msra.gmra.mrb[12].mxu0 %v2661_v49  ;;  %3570 = vmatmul.mubr.bf16.vlgmr.msra.gmra.mrb[24].mxu1 %v2661_v49  ;;  %v4834_v49 = vld [vmem:[#allocation13 + $0x3c8] ss:$16 sps:$4 sm:$0xff]  }
 0x74b   :  { %3497 = vmatpush1.bf16.msra.mxu0 %v4747_v47  ;;  %3579 = vmatpush1.bf16.msra.mxu1 %v4750_v48  ;;  %v4836_v47 = vld [vmem:[#allocation13 + $0x3cc] ss:$16 sps:$4 sm:$0xff]   ;;  %v4831_v48 = vld [vmem:[#allocation13 + $0x3c0] ss:$16 sps:$4 sm:$0xff]  }
 0x74c   :  { %3528 = vmatprep.mubr.bf16.mxu0 %v2664_v52  ;;  %3610 = vmatprep.mubr.bf16.mxu1 %v2664_v52  ;;  %v4842_v52 = vld [vmem:[#allocation13 + $0x3ec] ss:$16 sps:$4 sm:$0xff]  }
 0x74d   :  { %3498 = vmatprep.subr.bf16.mxu0 %v4755_v50  ;;  %3580 = vmatprep.subr.bf16.mxu1 %v4758_v51  ;;  %v2651_v50 = vadd.f32 %v5369_v32, %v2246_v45  ;;  %v4839_v51 = vld [vmem:[#allocation13 + $0x3e4] ss:$16 sps:$4 sm:$0xff]   ;;  %v2793_v32 = vld [vmem:[%s5409_s16] sm:$0xf]  ;;  %s4997_s16 = scalar_lea.vmem %s3630_s9, 512 }
 0x74e   :  { %p4998_p0 = scmp.ne.s32.totalorder %s3630_s9, %s4997_s16  ;;  %p5003_p2 = scmp.lt.s32.totalorder %s4997_s16, %s4997_s16 }
 0x74f   :  { %3499 = vmatpush1.bf16.msra.mxu0 %v4753_v54  ;;  %3581 = vmatpush1.bf16.msra.mxu1 %v4756_v57  ;;  %v4837_v54 = vld [vmem:[#allocation13 + $0x3e0] ss:$16 sps:$4 sm:$0xff]   ;;  %v4840_v57 = vld [vmem:[#allocation13 + $0x3e8] ss:$16 sps:$4 sm:$0xff]  }
 0x750   :  { %3500 = vmatprep.subr.bf16.mxu0 %v4761_v58  ;;  %3582 = vmatprep.subr.bf16.mxu1 %v4764_v59  ;;  %v2659_v58 = vmax.f32 %v2651_v50, 0.0  ;;  %v2798_v59 = vrot.slane %v2793_v32, %v5270_v53  ;;  %p5004_p3 = por %p5003_p2, %p5002_p1 }
 0x752   :  { %v2663_v27 = vpack.c.bf16 %v2659_v58, %v2659_v58  ;;  %p5005_p4 = pnand %p5004_p3, %p4998_p0 }
 0x753   :  { %3501 = vmatpush1.bf16.msra.mxu0 %v4759_v60  ;;  %3583 = vmatpush1.bf16.msra.mxu1 %v4762_v61  ;;  %v2806_v60 = vrot.slane %v2793_v32, %v5292_v38  ;;  %v2802_v61 = vrot.slane %v2793_v32, %v5278_v55 }
 0x754   :  { %3502 = vmatprep.subr.bf16.mxu0 %v4767_v62  ;;  %3584 = vmatprep.subr.bf16.mxu1 %v4770_v63  ;;  %v2810_v62 = vrot.slane %v2793_v32, %v5281_v56 }
 0x757   :  { %3503 = vmatpush1.bf16.msra.mxu0 %v4765_v0  ;;  %3585 = vmatpush1.bf16.msra.mxu1 %v4768_v1 }
 0x758   :  { %3504 = vmatprep.subr.bf16.mxu0 %v4773_v2  ;;  %3586 = vmatprep.subr.bf16.mxu1 %v4776_v3 }
 0x75b   :  { %3505 = vmatpush1.bf16.msra.mxu0 %v4771_v4  ;;  %3587 = vmatpush1.bf16.msra.mxu1 %v4774_v5 }
 0x75c   :  { %3506 = vmatprep.subr.bf16.mxu0 %v4779_v6  ;;  %3588 = vmatprep.subr.bf16.mxu1 %v4782_v7 }
 0x75f   :  { %3507 = vmatpush1.bf16.msra.mxu0 %v4777_v8  ;;  %3589 = vmatpush1.bf16.msra.mxu1 %v4780_v9 }
 0x760   :  { %3508 = vmatprep.subr.bf16.mxu0 %v4785_v10  ;;  %3590 = vmatprep.subr.bf16.mxu1 %v4788_v11 }
 0x763   :  { %3509 = vmatpush1.bf16.msra.mxu0 %v4783_v12  ;;  %3591 = vmatpush1.bf16.msra.mxu1 %v4786_v13 }
 0x764   :  { %3510 = vmatprep.subr.bf16.mxu0 %v4791_v14  ;;  %3592 = vmatprep.subr.bf16.mxu1 %v4794_v15 }
 0x767   :  { %3511 = vmatpush1.bf16.msra.mxu0 %v4789_v16  ;;  %3593 = vmatpush1.bf16.msra.mxu1 %v4792_v17 }
 0x768   :  { %3512 = vmatprep.subr.bf16.mxu0 %v4797_v18  ;;  %3594 = vmatprep.subr.bf16.mxu1 %v4800_v19 }
 0x76b   :  { %3513 = vmatpush1.bf16.msra.mxu0 %v4795_v20  ;;  %3595 = vmatpush1.bf16.msra.mxu1 %v4798_v21 }
 0x76c   :  { %3514 = vmatprep.subr.bf16.mxu0 %v4803_v22  ;;  %3596 = vmatprep.subr.bf16.mxu1 %v4806_v23 }
 0x76f   :  { %3515 = vmatpush1.bf16.msra.mxu0 %v4801_v24  ;;  %3597 = vmatpush1.bf16.msra.mxu1 %v4804_v25 }
 0x770   :  { %3516 = vmatprep.subr.bf16.mxu0 %v4809_v26  ;;  %3598 = vmatprep.subr.bf16.mxu1 %v4812_v28 }
 0x773   :  { %3517 = vmatpush1.bf16.msra.mxu0 %v4807_v29  ;;  %3599 = vmatpush1.bf16.msra.mxu1 %v4810_v30 }
 0x774   :  { %3518 = vmatprep.subr.bf16.mxu0 %v4815_v31  ;;  %3600 = vmatprep.subr.bf16.mxu1 %v4818_v33 }
 0x777   :  { %3519 = vmatpush1.bf16.msra.mxu0 %v4813_v34  ;;  %3601 = vmatpush1.bf16.msra.mxu1 %v4816_v35 }
 0x778   :  { %3520 = vmatprep.subr.bf16.mxu0 %v4821_v36  ;;  %3602 = vmatprep.subr.bf16.mxu1 %v4824_v37 }
 0x77b   :  { %3521 = vmatpush1.bf16.msra.mxu0 %v4819_v39  ;;  %3603 = vmatpush1.bf16.msra.mxu1 %v4822_v40 }
 0x77c   :  { %3522 = vmatprep.subr.bf16.mxu0 %v4827_v41  ;;  %3604 = vmatprep.subr.bf16.mxu1 %v4830_v42 }
 0x77f   :  { %3523 = vmatpush1.bf16.msra.mxu0 %v4825_v43  ;;  %3605 = vmatpush1.bf16.msra.mxu1 %v4828_v44 }
 0x780   :  { %3524 = vmatprep.subr.bf16.mxu0 %v4833_v46  ;;  %3606 = vmatprep.subr.bf16.mxu1 %v4836_v47 }
 0x783   :  { %3525 = vmatpush1.bf16.msra.mxu0 %v4831_v48  ;;  %3607 = vmatpush1.bf16.msra.mxu1 %v4834_v49 }
 0x784   :  { %3526 = vmatprep.subr.bf16.mxu0 %v4839_v51  ;;  %3608 = vmatprep.subr.bf16.mxu1 %v4842_v52 }
 0x787   :  { %3527 = vmatpush1.bf16.msra.mxu0 %v4837_v54  ;;  %3609 = vmatpush1.bf16.msra.mxu1 %v4840_v57 }
 0x78a   :  { %3529 = vmatmul.mubr.bf16.vlgmr.msra.gmra.mrb[12].mxu0 %v2663_v27  ;;  %3611 = vmatmul.mubr.bf16.vlgmr.msra.gmra.mrb[24].mxu1 %v2663_v27 }
 0x85d   :  { %v3530_v63 = vpop.f32.mrb[12].mxu0  ;;  %v3612_v0 = vpop.f32.mrb[24].mxu1 }
 0x85e   :  { %v4166_v1 = vadd.f32 %v3530_v63, %v2798_v59  ;;  %v4168_v2 = vadd.f32 %v3612_v0, %v2806_v60  ;;  %v3532_v3 = vpop.f32.mrb[13].mxu0  ;;  %v3614_v4 = vpop.f32.mrb[25].mxu1 }
 0x85f   :  { %v4167_v5 = vadd.f32 %v3532_v3, %v2802_v61  ;;  %v4169_v6 = vadd.f32 %v3614_v4, %v2810_v62  ;;  %v3534_v7 = vpop.f32.mrb[14].mxu0  ;;  %v3616_v8 = vpop.f32.mrb[26].mxu1 }
 0x860   :  { %3619 = vst [vmem:[#allocation14] sm:$0xff] %v4166_v1  ;;  %3621 = vst [vmem:[#allocation14 + $0x10] sm:$0xff] %v4168_v2  ;;  %v3535_v53 = vpop.f32.mrb[15].mxu0  ;;  %v3617_v38 = vpop.f32.mrb[27].mxu1 }
 0x861   :  { %3620 = vst [vmem:[#allocation14 + $0x8] sm:$0xff] %v4167_v5  ;;  %3622 = vst [vmem:[#allocation14 + $0x18] sm:$0xff] %v4169_v6 }
 0x862   :  { %5008 = shalt.err (!%p5005_p4)
}
 0x863   :  { %s5009_s27 = scalar_lea.hbm %s5410_s17, 512 }
 0x864   :  { %p5010_p5 = scmp.ne.s32.totalorder %s5410_s17, %s5009_s27  ;;  %p5013_p6 = scmp.lt.u32.totalorder %s5009_s27, %s5410_s17 }
 0x866   :  { %p5015_p7 = pnand %p5013_p6, %p5010_p5 }
 0x868   :  { %5018 = shalt.err (!%p5015_p7)
}
 0x869   :  { %3632 = dma.vmem_to_hbm [thread:$0]  %s3630_s9, 512, %s5410_s17, [#allocation4]  }
 0x86a   :  { %5027 = dma.done.wait [#allocation4], 512  }
 0x86b   :  { %5028 = vsyncadd [#allocation4], 4294966784 }
 0x86c   :  { %3636 = vsyncpa [#allocation3], 1 }
 0x86d   :  { %3637 = vsyncpa [#allocation6], 1 }
 0x86e   :  { %3638 = vsyncpa [#allocation9], 1 }
 0x86f   :  { %3639 = vsyncpa [#allocation12], 1 }
 0x870   :  { %3640 = vsyncpa [#allocation4], 1 }

</bundles_post_ra>
